<compile_context>
chip_gen: v6e
topology: v6e:2x2x1
jax: 0.10.0
libtpu: 0.0.40
codegen_flags: <defaults>
</compile_context>

<pallas_src>
import jax
import jax.numpy as jnp
from jax.experimental import pallas as pl
from jax.experimental.pallas import tpu as pltpu


def _vmem_spec():
    return pl.BlockSpec(memory_space=pltpu.MemorySpace.VMEM)


# ----------------------------------------------------------------------------- fused kernel
def _fused_autoencoder_kernel(x_ref,
                              s1_ref, m1_ref, b1_ref, r1_ref, q1_ref,
                              s2_ref, m2_ref, b2_ref, r2_ref, q2_ref,
                              u1_ref, p1_ref, tb1_ref,
                              u2_ref, p2_ref, tb2_ref,
                              o_ref):
    dot = lambda a, b: jnp.dot(a, b, preferred_element_type=jnp.float32)

    x = x_ref[...]                                            # (N*16, 16)

    # conv1 (3x3, pad 1) + ReLU                               -> (N*16, 16*16)
    h = dot(x, m1_ref[1]) + b1_ref[...]
    h = h + dot(dot(s1_ref[0], x), m1_ref[0])
    h = h + dot(dot(s1_ref[1], x), m1_ref[2])
    h = jnp.maximum(h, 0.0)

    # maxpool 2x2 / stride 2                                  -> (N*8, 8*16)
    t = jnp.maximum(dot(r1_ref[0], h), dot(r1_ref[1], h))
    h = jnp.maximum(dot(t, q1_ref[0]), dot(t, q1_ref[1]))

    # conv2 (3x3, pad 1) + ReLU                               -> (N*8, 8*4)
    g = dot(h, m2_ref[1]) + b2_ref[...]
    g = g + dot(dot(s2_ref[0], h), m2_ref[0])
    g = g + dot(dot(s2_ref[1], h), m2_ref[2])
    g = jnp.maximum(g, 0.0)

    # maxpool 2x2 / stride 2                                  -> (N*4, 4*4)
    t = jnp.maximum(dot(r2_ref[0], g), dot(r2_ref[1], g))
    g = jnp.maximum(dot(t, q2_ref[0]), dot(t, q2_ref[1]))

    # t_conv1 (2x2, stride 2) + ReLU                          -> (N*8, 8*16)
    u = dot(p1_ref[0], dot(g, u1_ref[0])) + dot(p1_ref[1], dot(g, u1_ref[1]))
    u = jnp.maximum(u + tb1_ref[...], 0.0)

    # t_conv2 (2x2, stride 2) + Sigmoid                       -> (N*16, 16)
    v = dot(p2_ref[0], dot(u, u2_ref[0])) + dot(p2_ref[1], dot(u, u2_ref[1]))
    v = v + tb2_ref[...]
    o_ref[...] = pl.reciprocal(1.0 + jnp.exp(-v), approx=True)


# ----------------------------------------------------------------------------- parameter packing (weight-only, one-time)
def _one_hot_rows(targets, ncols):
    return (targets[:, None] == jnp.arange(ncols)[None, :]).astype(jnp.float32)


def _conv_row_shift_mats(n, h):
    """0/1 matrices shifting rows by -1 / +1 inside each image (zeros at the border)."""
    r = jnp.arange(n * h)
    img, i = r // h, r % h
    mats = []
    for d in (-1, 1):
        tgt = jnp.where((i + d >= 0) & (i + d < h), img * h + i + d, -1)
        mats.append(_one_hot_rows(tgt, n * h))
    return jnp.stack(mats, 0)                                 # (2, n*h, n*h)


def _conv_lane_mats(w, width):
    """Banded (W*Cin, W*Cout) matrices, one per ky.  w: (Cout, Cin, 3, 3) PyTorch layout."""
    co_, ci_, k, _ = w.shape
    p = jnp.arange(width * ci_); jp, ci = p // ci_, p % ci_
    q = jnp.arange(width * co_); j, co = q // co_, q % co_
    kx = jp[:, None] - j[None, :] + 1
    valid = (kx >= 0) & (kx < k)
    kxc = jnp.clip(kx, 0, k - 1)
    mats = []
    for ky in range(k):
        wk = w[:, :, ky, :]                                   # (Cout, Cin, 3)
        vals = wk[co[None, :], ci[:, None], kxc]              # (W*Cin, W*Cout)
        mats.append(jnp.where(valid, vals, 0.0))
    return jnp.stack(mats, 0).astype(jnp.float32)             # (3, W*Cin, W*Cout)


def _pool_mats(n, h, width, c):
    """Row (even/odd) and lane (even/odd) 0/1 selection matrices for 2x2/2 max-pool."""
    ho, wo = h // 2, width // 2
    k = jnp.arange(n * ho)
    re = (k // ho) * h + 2 * (k % ho)
    rmats = jnp.stack([_one_hot_rows(re, n * h), _one_hot_rows(re + 1, n * h)], 0)
    q = jnp.arange(wo * c)
    se = 2 * (q // c) * c + q % c
    lin = jnp.arange(width * c)[:, None]
    qmats = jnp.stack([(lin == se[None, :]).astype(jnp.float32),
                       (lin == (se + c)[None, :]).astype(jnp.float32)], 0)
    return rmats, qmats                                       # (2, n*h/2, n*h), (2, W*c, W*c/2)


def _tconv_lane_mats(w, win):
    """(Win*Cin, 2*Win*Cout) matrices, one per output-row parity a.  w: (Cin, Cout, 2, 2)."""
    ci_, co_, k, _ = w.shape
    p = jnp.arange(win * ci_); jin, ci = p // ci_, p % ci_
    q = jnp.arange(2 * win * co_); jo, co = q // co_, q % co_
    valid = jin[:, None] == (jo // 2)[None, :]
    mats = []
    for a in range(k):
        wa = w[:, :, a, :]                                    # (Cin, Cout, 2)
        vals = wa[ci[:, None], co[None, :], (jo % 2)[None, :]]
        mats.append(jnp.where(valid, vals, 0.0))
    return jnp.stack(mats, 0).astype(jnp.float32)             # (2, Win*Cin, 2*Win*Cout)


def _tconv_row_mats(n, hin):
    """0/1 matrices placing input row (n, i) at output row (n, 2i + a)."""
    rr = jnp.arange(n * 2 * hin)
    img, i2 = rr // (2 * hin), rr % (2 * hin)
    src = img * hin + i2 // 2
    mats = [_one_hot_rows(jnp.where(i2 % 2 == a, src, -1), n * hin) for a in range(2)]
    return jnp.stack(mats, 0)                                 # (2, 2*n*hin, n*hin)


def pack_params(p, n=2, h=16, w=16):
    """One-time repacking of the PyTorch parameters into the matmul operands of the kernel."""
    f32 = lambda a: jnp.asarray(a, jnp.float32)
    w1, b1 = f32(p["w1"]), f32(p["b1"])
    w2, b2 = f32(p["w2"]), f32(p["b2"])
    tw1, tb1 = f32(p["tw1"]), f32(p["tb1"])
    tw2, tb2 = f32(p["tw2"]), f32(p["tb2"])
    c1, c2 = w1.shape[0], w2.shape[0]                         # 16, 4
    h2, wd2 = h // 2, w // 2                                  # 8, 8
    h3, wd3 = h2 // 2, wd2 // 2                               # 4, 4
    r1, q1 = _pool_mats(n, h, w, c1)
    r2, q2 = _pool_mats(n, h2, wd2, c2)
    return dict(
        s1=_conv_row_shift_mats(n, h),          # (2, 32, 32)
        m1=_conv_lane_mats(w1, w),              # (3, 16, 256)
        b1=jnp.tile(b1, w)[None, :],            # (1, 256)
        r1=r1, q1=q1,                           # (2,16,32), (2,256,128)
        s2=_conv_row_shift_mats(n, h2),         # (2, 16, 16)
        m2=_conv_lane_mats(w2, wd2),            # (3, 128, 32)
        b2=jnp.tile(b2, wd2)[None, :],          # (1, 32)
        r2=r2, q2=q2,                           # (2,8,16), (2,32,16)
        u1=_tconv_lane_mats(tw1, wd3),          # (2, 16, 128)
        p1=_tconv_row_mats(n, h3),              # (2, 16, 8)
        tb1=jnp.tile(tb1, 2 * wd3)[None, :],    # (1, 128)
        u2=_tconv_lane_mats(tw2, wd2),          # (2, 128, 16)
        p2=_tconv_row_mats(n, h2),              # (2, 32, 16)
        tb2=jnp.tile(tb2, 2 * wd2)[None, :],    # (1, 16)
    )


# ----------------------------------------------------------------------------- forward wrappers
def conv_autoencoder_forward_packed(x_nchw, packed):
    # NOTE: for larger batches this extends naturally with a batch grid axis marked
    # "parallel" (v7x dual TensorCore); at N=2 a single invocation is optimal.
    n, _, h, w = x_nchw.shape
    x2d = x_nchw.reshape(n * h, w).astype(jnp.float32)        # rows = (n, i), lanes = j
    out2d = pl.pallas_call(
        _fused_autoencoder_kernel,
        out_shape=jax.ShapeDtypeStruct((n * h, w), jnp.float32),
        in_specs=[_vmem_spec() for _ in range(17)],
        out_specs=_vmem_spec(),
    )(x2d,
      packed["s1"], packed["m1"], packed["b1"], packed["r1"], packed["q1"],
      packed["s2"], packed["m2"], packed["b2"], packed["r2"], packed["q2"],
      packed["u1"], packed["p1"], packed["tb1"],
      packed["u2"], packed["p2"], packed["tb2"])
    return out2d.reshape(n, 1, h, w)


def conv_autoencoder_forward(x_nchw, p):
    n, _, h, w = x_nchw.shape
    return conv_autoencoder_forward_packed(x_nchw, pack_params(p, n, h, w))


# ----------------------------------------------------------------------------- pure-JAX reference (for checking)
def _reference_forward(x, p):
    hp = jax.lax.Precision.HIGHEST

    def conv(x, w, b):
        n, c, h, wd = x.shape
        co = w.shape[0]
        xp = jnp.pad(x, ((0, 0), (0, 0), (1, 1), (1, 1)))
        out = jnp.broadcast_to(b[None, :, None, None], (n, co, h, wd)).astype(jnp.float32)
        for ky in range(3):
            for kx in range(3):
                out = out + jnp.einsum("nchw,oc->nohw", xp[:, :, ky:ky + h, kx:kx + wd],
                                       w[:, :, ky, kx], precision=hp)
        return out

    def pool(x):
        n, c, h, wd = x.shape
        return x.reshape(n, c, h // 2, 2, wd // 2, 2).max(axis=(3, 5))

    def tconv(x, w, b):
        n, ci, h, wd = x.shape
        co = w.shape[1]
        t = jnp.einsum("nchw,coyx->nohwyx", x, w, precision=hp)
        t = t.transpose(0, 1, 2, 4, 3, 5).reshape(n, co, 2 * h, 2 * wd)
        return t + b[None, :, None, None]

    h = jax.nn.relu(conv(x, p["w1"], p["b1"]))
    h = pool(h)
    h = jax.nn.relu(conv(h, p["w2"], p["b2"]))
    h = pool(h)
    h = jax.nn.relu(tconv(h, p["tw1"], p["tb1"]))
    h = jax.nn.sigmoid(tconv(h, p["tw2"], p["tb2"]))
    return h


if __name__ == "__main__":
    key = jax.random.PRNGKey(0)
    keys = jax.random.split(key, 9)
    # deterministic synthetic parameters (shapes match ConvAutoencoder.__init__)
    p = {
        "w1": 0.3 * jax.random.normal(keys[0], (16, 1, 3, 3), jnp.float32),
        "b1": 0.1 * jax.random.normal(keys[1], (16,), jnp.float32),
        "w2": 0.2 * jax.random.normal(keys[2], (4, 16, 3, 3), jnp.float32),
        "b2": 0.1 * jax.random.normal(keys[3], (4,), jnp.float32),
        "tw1": 0.3 * jax.random.normal(keys[4], (4, 16, 2, 2), jnp.float32),
        "tb1": 0.1 * jax.random.normal(keys[5], (16,), jnp.float32),
        "tw2": 0.3 * jax.random.normal(keys[6], (16, 1, 2, 2), jnp.float32),
        "tb2": 0.1 * jax.random.normal(keys[7], (1,), jnp.float32),
    }
    x = jax.random.normal(keys[8], (2, 1, 16, 16), jnp.float32)   # NCHW, 1 input channel

    packed = pack_params(p, n=2, h=16, w=16)          # one-time, parameter-only repack
    fwd = jax.jit(conv_autoencoder_forward_packed)
    out = jax.block_until_ready(fwd(x, packed))

    ref = _reference_forward(x, p)
    assert out.shape == (2, 1, 16, 16) and out.dtype == jnp.float32
    assert bool(jnp.allclose(out, ref, atol=2e-3, rtol=2e-3)), "mismatch vs reference"
    print("KERNEL_OK")
</pallas_src>

<mosaic_0001>
module attributes {stable_mosaic.version = 11 : i64} {
  func.func @_fused_autoencoder_kernel(%arg0: memref<32x16xf32, #tpu.memory_space<vmem>>, %arg1: memref<2x32x32xf32, #tpu.memory_space<vmem>>, %arg2: memref<3x16x256xf32, #tpu.memory_space<vmem>>, %arg3: memref<1x256xf32, #tpu.memory_space<vmem>>, %arg4: memref<2x16x32xf32, #tpu.memory_space<vmem>>, %arg5: memref<2x256x128xf32, #tpu.memory_space<vmem>>, %arg6: memref<2x16x16xf32, #tpu.memory_space<vmem>>, %arg7: memref<3x128x32xf32, #tpu.memory_space<vmem>>, %arg8: memref<1x32xf32, #tpu.memory_space<vmem>>, %arg9: memref<2x8x16xf32, #tpu.memory_space<vmem>>, %arg10: memref<2x32x16xf32, #tpu.memory_space<vmem>>, %arg11: memref<2x16x128xf32, #tpu.memory_space<vmem>>, %arg12: memref<2x16x8xf32, #tpu.memory_space<vmem>>, %arg13: memref<1x128xf32, #tpu.memory_space<vmem>>, %arg14: memref<2x128x16xf32, #tpu.memory_space<vmem>>, %arg15: memref<2x32x16xf32, #tpu.memory_space<vmem>>, %arg16: memref<1x16xf32, #tpu.memory_space<vmem>>, %arg17: memref<32x16xf32, #tpu.memory_space<vmem>>) attributes {dimension_semantics = [], scalar_prefetch = 0 : i64, scratch_operands = 0 : i64, tpu.core_type = #tpu.core_type<tc>} {
    %c0 = arith.constant 0 : index
    %c0_0 = arith.constant 0 : index
    %0 = vector.load %arg0[%c0, %c0_0] : memref<32x16xf32, #tpu.memory_space<vmem>>, vector<32x16xf32>
    %c1 = arith.constant 1 : index
    %c0_1 = arith.constant 0 : index
    %c0_2 = arith.constant 0 : index
    %1 = vector.load %arg2[%c1, %c0_1, %c0_2] : memref<3x16x256xf32, #tpu.memory_space<vmem>>, vector<1x16x256xf32>
    %2 = vector.shape_cast %1 : vector<1x16x256xf32> to vector<16x256xf32>
    %cst = arith.constant dense<0.000000e+00> : vector<32x256xf32>
    %3 = tpu.matmul %0, %2, %cst {dimension_numbers = #tpu.dot_dimension_numbers<[1], [0], [0], [1], [0, 0, 1, 1], [], []>} : vector<32x16xf32>, vector<16x256xf32>, vector<32x256xf32> -> vector<32x256xf32>
    %c0_3 = arith.constant 0 : index
    %c0_4 = arith.constant 0 : index
    %4 = vector.load %arg3[%c0_3, %c0_4] : memref<1x256xf32, #tpu.memory_space<vmem>>, vector<1x256xf32>
    %5 = vector.broadcast %4 : vector<1x256xf32> to vector<32x256xf32>
    %6 = arith.addf %3, %5 : vector<32x256xf32>
    %c0_5 = arith.constant 0 : index
    %c0_6 = arith.constant 0 : index
    %c0_7 = arith.constant 0 : index
    %7 = vector.load %arg1[%c0_5, %c0_6, %c0_7] : memref<2x32x32xf32, #tpu.memory_space<vmem>>, vector<1x32x32xf32>
    %8 = vector.shape_cast %7 : vector<1x32x32xf32> to vector<32x32xf32>
    %cst_8 = arith.constant dense<0.000000e+00> : vector<32x16xf32>
    %9 = tpu.matmul %8, %0, %cst_8 {dimension_numbers = #tpu.dot_dimension_numbers<[1], [0], [0], [1], [0, 0, 1, 1], [], []>} : vector<32x32xf32>, vector<32x16xf32>, vector<32x16xf32> -> vector<32x16xf32>
    %c0_9 = arith.constant 0 : index
    %c0_10 = arith.constant 0 : index
    %c0_11 = arith.constant 0 : index
    %10 = vector.load %arg2[%c0_9, %c0_10, %c0_11] : memref<3x16x256xf32, #tpu.memory_space<vmem>>, vector<1x16x256xf32>
    %11 = vector.shape_cast %10 : vector<1x16x256xf32> to vector<16x256xf32>
    %cst_12 = arith.constant dense<0.000000e+00> : vector<32x256xf32>
    %12 = tpu.matmul %9, %11, %cst_12 {dimension_numbers = #tpu.dot_dimension_numbers<[1], [0], [0], [1], [0, 0, 1, 1], [], []>} : vector<32x16xf32>, vector<16x256xf32>, vector<32x256xf32> -> vector<32x256xf32>
    %13 = arith.addf %6, %12 : vector<32x256xf32>
    %c1_13 = arith.constant 1 : index
    %c0_14 = arith.constant 0 : index
    %c0_15 = arith.constant 0 : index
    %14 = vector.load %arg1[%c1_13, %c0_14, %c0_15] : memref<2x32x32xf32, #tpu.memory_space<vmem>>, vector<1x32x32xf32>
    %15 = vector.shape_cast %14 : vector<1x32x32xf32> to vector<32x32xf32>
    %cst_16 = arith.constant dense<0.000000e+00> : vector<32x16xf32>
    %16 = tpu.matmul %15, %0, %cst_16 {dimension_numbers = #tpu.dot_dimension_numbers<[1], [0], [0], [1], [0, 0, 1, 1], [], []>} : vector<32x32xf32>, vector<32x16xf32>, vector<32x16xf32> -> vector<32x16xf32>
    %c2 = arith.constant 2 : index
    %c0_17 = arith.constant 0 : index
    %c0_18 = arith.constant 0 : index
    %17 = vector.load %arg2[%c2, %c0_17, %c0_18] : memref<3x16x256xf32, #tpu.memory_space<vmem>>, vector<1x16x256xf32>
    %18 = vector.shape_cast %17 : vector<1x16x256xf32> to vector<16x256xf32>
    %cst_19 = arith.constant dense<0.000000e+00> : vector<32x256xf32>
    %19 = tpu.matmul %16, %18, %cst_19 {dimension_numbers = #tpu.dot_dimension_numbers<[1], [0], [0], [1], [0, 0, 1, 1], [], []>} : vector<32x16xf32>, vector<16x256xf32>, vector<32x256xf32> -> vector<32x256xf32>
    %20 = arith.addf %13, %19 : vector<32x256xf32>
    %cst_20 = arith.constant 0.000000e+00 : f32
    %21 = vector.broadcast %cst_20 : f32 to vector<32x256xf32>
    %22 = arith.maximumf %20, %21 : vector<32x256xf32>
    %c0_21 = arith.constant 0 : index
    %c0_22 = arith.constant 0 : index
    %c0_23 = arith.constant 0 : index
    %23 = vector.load %arg4[%c0_21, %c0_22, %c0_23] : memref<2x16x32xf32, #tpu.memory_space<vmem>>, vector<1x16x32xf32>
    %24 = vector.shape_cast %23 : vector<1x16x32xf32> to vector<16x32xf32>
    %cst_24 = arith.constant dense<0.000000e+00> : vector<16x256xf32>
    %25 = tpu.matmul %24, %22, %cst_24 {dimension_numbers = #tpu.dot_dimension_numbers<[1], [0], [0], [1], [0, 0, 1, 1], [], []>} : vector<16x32xf32>, vector<32x256xf32>, vector<16x256xf32> -> vector<16x256xf32>
    %c1_25 = arith.constant 1 : index
    %c0_26 = arith.constant 0 : index
    %c0_27 = arith.constant 0 : index
    %26 = vector.load %arg4[%c1_25, %c0_26, %c0_27] : memref<2x16x32xf32, #tpu.memory_space<vmem>>, vector<1x16x32xf32>
    %27 = vector.shape_cast %26 : vector<1x16x32xf32> to vector<16x32xf32>
    %cst_28 = arith.constant dense<0.000000e+00> : vector<16x256xf32>
    %28 = tpu.matmul %27, %22, %cst_28 {dimension_numbers = #tpu.dot_dimension_numbers<[1], [0], [0], [1], [0, 0, 1, 1], [], []>} : vector<16x32xf32>, vector<32x256xf32>, vector<16x256xf32> -> vector<16x256xf32>
    %29 = arith.maximumf %25, %28 : vector<16x256xf32>
    %c0_29 = arith.constant 0 : index
    %c0_30 = arith.constant 0 : index
    %c0_31 = arith.constant 0 : index
    %30 = vector.load %arg5[%c0_29, %c0_30, %c0_31] : memref<2x256x128xf32, #tpu.memory_space<vmem>>, vector<1x256x128xf32>
    %31 = vector.shape_cast %30 : vector<1x256x128xf32> to vector<256x128xf32>
    %cst_32 = arith.constant dense<0.000000e+00> : vector<16x128xf32>
    %32 = tpu.matmul %29, %31, %cst_32 {dimension_numbers = #tpu.dot_dimension_numbers<[1], [0], [0], [1], [0, 0, 1, 1], [], []>} : vector<16x256xf32>, vector<256x128xf32>, vector<16x128xf32> -> vector<16x128xf32>
    %c1_33 = arith.constant 1 : index
    %c0_34 = arith.constant 0 : index
    %c0_35 = arith.constant 0 : index
    %33 = vector.load %arg5[%c1_33, %c0_34, %c0_35] : memref<2x256x128xf32, #tpu.memory_space<vmem>>, vector<1x256x128xf32>
    %34 = vector.shape_cast %33 : vector<1x256x128xf32> to vector<256x128xf32>
    %cst_36 = arith.constant dense<0.000000e+00> : vector<16x128xf32>
    %35 = tpu.matmul %29, %34, %cst_36 {dimension_numbers = #tpu.dot_dimension_numbers<[1], [0], [0], [1], [0, 0, 1, 1], [], []>} : vector<16x256xf32>, vector<256x128xf32>, vector<16x128xf32> -> vector<16x128xf32>
    %36 = arith.maximumf %32, %35 : vector<16x128xf32>
    %c1_37 = arith.constant 1 : index
    %c0_38 = arith.constant 0 : index
    %c0_39 = arith.constant 0 : index
    %37 = vector.load %arg7[%c1_37, %c0_38, %c0_39] : memref<3x128x32xf32, #tpu.memory_space<vmem>>, vector<1x128x32xf32>
    %38 = vector.shape_cast %37 : vector<1x128x32xf32> to vector<128x32xf32>
    %cst_40 = arith.constant dense<0.000000e+00> : vector<16x32xf32>
    %39 = tpu.matmul %36, %38, %cst_40 {dimension_numbers = #tpu.dot_dimension_numbers<[1], [0], [0], [1], [0, 0, 1, 1], [], []>} : vector<16x128xf32>, vector<128x32xf32>, vector<16x32xf32> -> vector<16x32xf32>
    %c0_41 = arith.constant 0 : index
    %c0_42 = arith.constant 0 : index
    %40 = vector.load %arg8[%c0_41, %c0_42] : memref<1x32xf32, #tpu.memory_space<vmem>>, vector<1x32xf32>
    %41 = vector.broadcast %40 : vector<1x32xf32> to vector<16x32xf32>
    %42 = arith.addf %39, %41 : vector<16x32xf32>
    %c0_43 = arith.constant 0 : index
    %c0_44 = arith.constant 0 : index
    %c0_45 = arith.constant 0 : index
    %43 = vector.load %arg6[%c0_43, %c0_44, %c0_45] : memref<2x16x16xf32, #tpu.memory_space<vmem>>, vector<1x16x16xf32>
    %44 = vector.shape_cast %43 : vector<1x16x16xf32> to vector<16x16xf32>
    %cst_46 = arith.constant dense<0.000000e+00> : vector<16x128xf32>
    %45 = tpu.matmul %44, %36, %cst_46 {dimension_numbers = #tpu.dot_dimension_numbers<[1], [0], [0], [1], [0, 0, 1, 1], [], []>} : vector<16x16xf32>, vector<16x128xf32>, vector<16x128xf32> -> vector<16x128xf32>
    %c0_47 = arith.constant 0 : index
    %c0_48 = arith.constant 0 : index
    %c0_49 = arith.constant 0 : index
    %46 = vector.load %arg7[%c0_47, %c0_48, %c0_49] : memref<3x128x32xf32, #tpu.memory_space<vmem>>, vector<1x128x32xf32>
    %47 = vector.shape_cast %46 : vector<1x128x32xf32> to vector<128x32xf32>
    %cst_50 = arith.constant dense<0.000000e+00> : vector<16x32xf32>
    %48 = tpu.matmul %45, %47, %cst_50 {dimension_numbers = #tpu.dot_dimension_numbers<[1], [0], [0], [1], [0, 0, 1, 1], [], []>} : vector<16x128xf32>, vector<128x32xf32>, vector<16x32xf32> -> vector<16x32xf32>
    %49 = arith.addf %42, %48 : vector<16x32xf32>
    %c1_51 = arith.constant 1 : index
    %c0_52 = arith.constant 0 : index
    %c0_53 = arith.constant 0 : index
    %50 = vector.load %arg6[%c1_51, %c0_52, %c0_53] : memref<2x16x16xf32, #tpu.memory_space<vmem>>, vector<1x16x16xf32>
    %51 = vector.shape_cast %50 : vector<1x16x16xf32> to vector<16x16xf32>
    %cst_54 = arith.constant dense<0.000000e+00> : vector<16x128xf32>
    %52 = tpu.matmul %51, %36, %cst_54 {dimension_numbers = #tpu.dot_dimension_numbers<[1], [0], [0], [1], [0, 0, 1, 1], [], []>} : vector<16x16xf32>, vector<16x128xf32>, vector<16x128xf32> -> vector<16x128xf32>
    %c2_55 = arith.constant 2 : index
    %c0_56 = arith.constant 0 : index
    %c0_57 = arith.constant 0 : index
    %53 = vector.load %arg7[%c2_55, %c0_56, %c0_57] : memref<3x128x32xf32, #tpu.memory_space<vmem>>, vector<1x128x32xf32>
    %54 = vector.shape_cast %53 : vector<1x128x32xf32> to vector<128x32xf32>
    %cst_58 = arith.constant dense<0.000000e+00> : vector<16x32xf32>
    %55 = tpu.matmul %52, %54, %cst_58 {dimension_numbers = #tpu.dot_dimension_numbers<[1], [0], [0], [1], [0, 0, 1, 1], [], []>} : vector<16x128xf32>, vector<128x32xf32>, vector<16x32xf32> -> vector<16x32xf32>
    %56 = arith.addf %49, %55 : vector<16x32xf32>
    %cst_59 = arith.constant 0.000000e+00 : f32
    %57 = vector.broadcast %cst_59 : f32 to vector<16x32xf32>
    %58 = arith.maximumf %56, %57 : vector<16x32xf32>
    %c0_60 = arith.constant 0 : index
    %c0_61 = arith.constant 0 : index
    %c0_62 = arith.constant 0 : index
    %59 = vector.load %arg9[%c0_60, %c0_61, %c0_62] : memref<2x8x16xf32, #tpu.memory_space<vmem>>, vector<1x8x16xf32>
    %60 = vector.shape_cast %59 : vector<1x8x16xf32> to vector<8x16xf32>
    %cst_63 = arith.constant dense<0.000000e+00> : vector<8x32xf32>
    %61 = tpu.matmul %60, %58, %cst_63 {dimension_numbers = #tpu.dot_dimension_numbers<[1], [0], [0], [1], [0, 0, 1, 1], [], []>} : vector<8x16xf32>, vector<16x32xf32>, vector<8x32xf32> -> vector<8x32xf32>
    %c1_64 = arith.constant 1 : index
    %c0_65 = arith.constant 0 : index
    %c0_66 = arith.constant 0 : index
    %62 = vector.load %arg9[%c1_64, %c0_65, %c0_66] : memref<2x8x16xf32, #tpu.memory_space<vmem>>, vector<1x8x16xf32>
    %63 = vector.shape_cast %62 : vector<1x8x16xf32> to vector<8x16xf32>
    %cst_67 = arith.constant dense<0.000000e+00> : vector<8x32xf32>
    %64 = tpu.matmul %63, %58, %cst_67 {dimension_numbers = #tpu.dot_dimension_numbers<[1], [0], [0], [1], [0, 0, 1, 1], [], []>} : vector<8x16xf32>, vector<16x32xf32>, vector<8x32xf32> -> vector<8x32xf32>
    %65 = arith.maximumf %61, %64 : vector<8x32xf32>
    %c0_68 = arith.constant 0 : index
    %c0_69 = arith.constant 0 : index
    %c0_70 = arith.constant 0 : index
    %66 = vector.load %arg10[%c0_68, %c0_69, %c0_70] : memref<2x32x16xf32, #tpu.memory_space<vmem>>, vector<1x32x16xf32>
    %67 = vector.shape_cast %66 : vector<1x32x16xf32> to vector<32x16xf32>
    %cst_71 = arith.constant dense<0.000000e+00> : vector<8x16xf32>
    %68 = tpu.matmul %65, %67, %cst_71 {dimension_numbers = #tpu.dot_dimension_numbers<[1], [0], [0], [1], [0, 0, 1, 1], [], []>} : vector<8x32xf32>, vector<32x16xf32>, vector<8x16xf32> -> vector<8x16xf32>
    %c1_72 = arith.constant 1 : index
    %c0_73 = arith.constant 0 : index
    %c0_74 = arith.constant 0 : index
    %69 = vector.load %arg10[%c1_72, %c0_73, %c0_74] : memref<2x32x16xf32, #tpu.memory_space<vmem>>, vector<1x32x16xf32>
    %70 = vector.shape_cast %69 : vector<1x32x16xf32> to vector<32x16xf32>
    %cst_75 = arith.constant dense<0.000000e+00> : vector<8x16xf32>
    %71 = tpu.matmul %65, %70, %cst_75 {dimension_numbers = #tpu.dot_dimension_numbers<[1], [0], [0], [1], [0, 0, 1, 1], [], []>} : vector<8x32xf32>, vector<32x16xf32>, vector<8x16xf32> -> vector<8x16xf32>
    %72 = arith.maximumf %68, %71 : vector<8x16xf32>
    %c0_76 = arith.constant 0 : index
    %c0_77 = arith.constant 0 : index
    %c0_78 = arith.constant 0 : index
    %73 = vector.load %arg12[%c0_76, %c0_77, %c0_78] : memref<2x16x8xf32, #tpu.memory_space<vmem>>, vector<1x16x8xf32>
    %74 = vector.shape_cast %73 : vector<1x16x8xf32> to vector<16x8xf32>
    %c0_79 = arith.constant 0 : index
    %c0_80 = arith.constant 0 : index
    %c0_81 = arith.constant 0 : index
    %75 = vector.load %arg11[%c0_79, %c0_80, %c0_81] : memref<2x16x128xf32, #tpu.memory_space<vmem>>, vector<1x16x128xf32>
    %76 = vector.shape_cast %75 : vector<1x16x128xf32> to vector<16x128xf32>
    %cst_82 = arith.constant dense<0.000000e+00> : vector<8x128xf32>
    %77 = tpu.matmul %72, %76, %cst_82 {dimension_numbers = #tpu.dot_dimension_numbers<[1], [0], [0], [1], [0, 0, 1, 1], [], []>} : vector<8x16xf32>, vector<16x128xf32>, vector<8x128xf32> -> vector<8x128xf32>
    %cst_83 = arith.constant dense<0.000000e+00> : vector<16x128xf32>
    %78 = tpu.matmul %74, %77, %cst_83 {dimension_numbers = #tpu.dot_dimension_numbers<[1], [0], [0], [1], [0, 0, 1, 1], [], []>} : vector<16x8xf32>, vector<8x128xf32>, vector<16x128xf32> -> vector<16x128xf32>
    %c1_84 = arith.constant 1 : index
    %c0_85 = arith.constant 0 : index
    %c0_86 = arith.constant 0 : index
    %79 = vector.load %arg12[%c1_84, %c0_85, %c0_86] : memref<2x16x8xf32, #tpu.memory_space<vmem>>, vector<1x16x8xf32>
    %80 = vector.shape_cast %79 : vector<1x16x8xf32> to vector<16x8xf32>
    %c1_87 = arith.constant 1 : index
    %c0_88 = arith.constant 0 : index
    %c0_89 = arith.constant 0 : index
    %81 = vector.load %arg11[%c1_87, %c0_88, %c0_89] : memref<2x16x128xf32, #tpu.memory_space<vmem>>, vector<1x16x128xf32>
    %82 = vector.shape_cast %81 : vector<1x16x128xf32> to vector<16x128xf32>
    %cst_90 = arith.constant dense<0.000000e+00> : vector<8x128xf32>
    %83 = tpu.matmul %72, %82, %cst_90 {dimension_numbers = #tpu.dot_dimension_numbers<[1], [0], [0], [1], [0, 0, 1, 1], [], []>} : vector<8x16xf32>, vector<16x128xf32>, vector<8x128xf32> -> vector<8x128xf32>
    %cst_91 = arith.constant dense<0.000000e+00> : vector<16x128xf32>
    %84 = tpu.matmul %80, %83, %cst_91 {dimension_numbers = #tpu.dot_dimension_numbers<[1], [0], [0], [1], [0, 0, 1, 1], [], []>} : vector<16x8xf32>, vector<8x128xf32>, vector<16x128xf32> -> vector<16x128xf32>
    %85 = arith.addf %78, %84 : vector<16x128xf32>
    %c0_92 = arith.constant 0 : index
    %c0_93 = arith.constant 0 : index
    %86 = vector.load %arg13[%c0_92, %c0_93] : memref<1x128xf32, #tpu.memory_space<vmem>>, vector<1x128xf32>
    %87 = vector.broadcast %86 : vector<1x128xf32> to vector<16x128xf32>
    %88 = arith.addf %85, %87 : vector<16x128xf32>
    %cst_94 = arith.constant 0.000000e+00 : f32
    %89 = vector.broadcast %cst_94 : f32 to vector<16x128xf32>
    %90 = arith.maximumf %88, %89 : vector<16x128xf32>
    %c0_95 = arith.constant 0 : index
    %c0_96 = arith.constant 0 : index
    %c0_97 = arith.constant 0 : index
    %91 = vector.load %arg15[%c0_95, %c0_96, %c0_97] : memref<2x32x16xf32, #tpu.memory_space<vmem>>, vector<1x32x16xf32>
    %92 = vector.shape_cast %91 : vector<1x32x16xf32> to vector<32x16xf32>
    %c0_98 = arith.constant 0 : index
    %c0_99 = arith.constant 0 : index
    %c0_100 = arith.constant 0 : index
    %93 = vector.load %arg14[%c0_98, %c0_99, %c0_100] : memref<2x128x16xf32, #tpu.memory_space<vmem>>, vector<1x128x16xf32>
    %94 = vector.shape_cast %93 : vector<1x128x16xf32> to vector<128x16xf32>
    %cst_101 = arith.constant dense<0.000000e+00> : vector<16x16xf32>
    %95 = tpu.matmul %90, %94, %cst_101 {dimension_numbers = #tpu.dot_dimension_numbers<[1], [0], [0], [1], [0, 0, 1, 1], [], []>} : vector<16x128xf32>, vector<128x16xf32>, vector<16x16xf32> -> vector<16x16xf32>
    %cst_102 = arith.constant dense<0.000000e+00> : vector<32x16xf32>
    %96 = tpu.matmul %92, %95, %cst_102 {dimension_numbers = #tpu.dot_dimension_numbers<[1], [0], [0], [1], [0, 0, 1, 1], [], []>} : vector<32x16xf32>, vector<16x16xf32>, vector<32x16xf32> -> vector<32x16xf32>
    %c1_103 = arith.constant 1 : index
    %c0_104 = arith.constant 0 : index
    %c0_105 = arith.constant 0 : index
    %97 = vector.load %arg15[%c1_103, %c0_104, %c0_105] : memref<2x32x16xf32, #tpu.memory_space<vmem>>, vector<1x32x16xf32>
    %98 = vector.shape_cast %97 : vector<1x32x16xf32> to vector<32x16xf32>
    %c1_106 = arith.constant 1 : index
    %c0_107 = arith.constant 0 : index
    %c0_108 = arith.constant 0 : index
    %99 = vector.load %arg14[%c1_106, %c0_107, %c0_108] : memref<2x128x16xf32, #tpu.memory_space<vmem>>, vector<1x128x16xf32>
    %100 = vector.shape_cast %99 : vector<1x128x16xf32> to vector<128x16xf32>
    %cst_109 = arith.constant dense<0.000000e+00> : vector<16x16xf32>
    %101 = tpu.matmul %90, %100, %cst_109 {dimension_numbers = #tpu.dot_dimension_numbers<[1], [0], [0], [1], [0, 0, 1, 1], [], []>} : vector<16x128xf32>, vector<128x16xf32>, vector<16x16xf32> -> vector<16x16xf32>
    %cst_110 = arith.constant dense<0.000000e+00> : vector<32x16xf32>
    %102 = tpu.matmul %98, %101, %cst_110 {dimension_numbers = #tpu.dot_dimension_numbers<[1], [0], [0], [1], [0, 0, 1, 1], [], []>} : vector<32x16xf32>, vector<16x16xf32>, vector<32x16xf32> -> vector<32x16xf32>
    %103 = arith.addf %96, %102 : vector<32x16xf32>
    %c0_111 = arith.constant 0 : index
    %c0_112 = arith.constant 0 : index
    %104 = vector.load %arg16[%c0_111, %c0_112] : memref<1x16xf32, #tpu.memory_space<vmem>>, vector<1x16xf32>
    %105 = vector.broadcast %104 : vector<1x16xf32> to vector<32x16xf32>
    %106 = arith.addf %103, %105 : vector<32x16xf32>
    %cst_113 = arith.constant 0.000000e+00 : f32
    %107 = vector.broadcast %cst_113 : f32 to vector<32x16xf32>
    %108 = arith.subf %107, %106 : vector<32x16xf32>
    %109 = math.exp %108 : vector<32x16xf32>
    %cst_114 = arith.constant 1.000000e+00 : f32
    %110 = vector.broadcast %cst_114 : f32 to vector<32x16xf32>
    %111 = arith.addf %110, %109 : vector<32x16xf32>
    %112 = tpu.reciprocal %111 {approx = true} : vector<32x16xf32> -> vector<32x16xf32>
    %c0_115 = arith.constant 0 : index
    %c0_116 = arith.constant 0 : index
    %113 = vector.load %arg17[%c0_115, %c0_116] : memref<32x16xf32, #tpu.memory_space<vmem>>, vector<32x16xf32>
    tpu.vector_store %arg17[%c0_115, %c0_116], %112 {strides = array<i32>} : memref<32x16xf32, #tpu.memory_space<vmem>>, vector<32x16xf32>,
    return
  }
}

</mosaic_0001>

<bundles_post_ra>
// kernel: conv_autoencoder_forward_packed.1
= control target key start
LH: loop header
LB: loop body
LE: loop exit
PB: predicated region body
PF: predicated region fallthrough
CT: control target
= control target key end

     0   :  { %s4095_s0 = inlined_call_operand.vmem [shape: f32[32,16], index: 0, kind: input, shape index: {}]   ;;  %s4096_s1 = inlined_call_operand.vmem [shape: f32[2,32,32], index: 1, kind: input, shape index: {}]   ;;  %s4097_s2 = inlined_call_operand.vmem [shape: f32[3,16,256], index: 2, kind: input, shape index: {}]   ;;  %s4098_s3 = inlined_call_operand.vmem [shape: f32[1,256], index: 3, kind: input, shape index: {}]   ;;  %s4099_s4 = inlined_call_operand.vmem [shape: f32[2,16,32], index: 4, kind: input, shape index: {}]   ;;  %s4100_s5 = inlined_call_operand.vmem [shape: f32[2,256,128], index: 5, kind: input, shape index: {}]   ;;  %s4101_s6 = inlined_call_operand.vmem [shape: f32[2,16,16], index: 6, kind: input, shape index: {}]   ;;  %s4102_s7 = inlined_call_operand.vmem [shape: f32[3,128,32], index: 7, kind: input, shape index: {}]   ;;  %s4103_s8 = inlined_call_operand.vmem [shape: f32[1,32], index: 8, kind: input, shape index: {}]   ;;  %s4104_s9 = inlined_call_operand.vmem [shape: f32[2,8,16], index: 9, kind: input, shape index: {}]   ;;  %s4105_s10 = inlined_call_operand.vmem [shape: f32[2,32,16], index: 10, kind: input, shape index: {}]   ;;  %s4106_s11 = inlined_call_operand.vmem [shape: f32[2,16,128], index: 11, kind: input, shape index: {}]   ;;  %s4107_s12 = inlined_call_operand.vmem [shape: f32[2,16,8], index: 12, kind: input, shape index: {}]   ;;  %s4108_s13 = inlined_call_operand.vmem [shape: f32[1,128], index: 13, kind: input, shape index: {}]   ;;  %s4109_s14 = inlined_call_operand.vmem [shape: f32[2,128,16], index: 14, kind: input, shape index: {}]   ;;  %s4110_s15 = inlined_call_operand.vmem [shape: f32[2,32,16], index: 15, kind: input, shape index: {}]   ;;  %s4111_s16 = inlined_call_operand.vmem [shape: f32[1,16], index: 16, kind: input, shape index: {}]   ;;  %s4112_s17 = inlined_call_operand.hbm [shape: f32[32,16], index: 17, kind: output, shape index: {}]  }
   0x1   :  { %4115 = sst [smem:[#allocation5_spill]] %s4095_s0 }
   0x2   :  { %4116 = sst [smem:[#allocation6_spill]] %s4096_s1 }
   0x3   :  { %v2536_v0 = vld [vmem:[%s4097_s2 + $0x38] sm:$0xff]  ;;  %s4117_s28 = sld [smem:[#allocation5_spill]]  ;;  %v2535_v2 = vld [vmem:[%s4097_s2 + $0x30] sm:$0xff]  ;;  %v2534_v3 = vld [vmem:[%s4097_s2 + $0x28] sm:$0xff]  ;;  %vm78_vm0 = vcmask 130048   ;;  %v3261_v8 = vmov 0.0  }
   0x4   :  { %119 = vmatprep.subr.mxu0 %v2536_v0  ;;  %v2533_v5 = vld [vmem:[%s4097_s2 + $0x20] sm:$0xff]  ;;  %155 = vmatprep.mubr.f32.mxu0 %v3261_v8  ;;  %s4118_s29 = sld [smem:[#allocation6_spill]]  ;;  %vm184_vm1 = vcmask 261120  }
   0x5   :  { %120 = vmatpush1.msra.mxu0 %v2535_v2 }
   0x6   :  { %121 = vmatprep.subr.mxu0 %v2534_v3 }
   0x7   :  { %122 = vmatpush1.msra.mxu0 %v2533_v5 }
   0x9   :  { %v60_v1 = vld [vmem:[%s4117_s28 + $0x18] sm:$0xff]  ;;  %v59_v4 = vld [vmem:[%s4117_s28 + $0x10] sm:$0xff]  ;;  %v57_v6 = vld [vmem:[%s4117_s28] sm:$0xff] }
   0xa   :  { %2921 = vmatprep.subr.mxu1 %v60_v1  ;;  %v58_v7 = vld [vmem:[%s4117_s28 + $0x8] sm:$0xff]  ;;  %v180_v9 = vld [vmem:[%s4118_s29] sm:$0xff]  ;;  %2537 = vmatmul.mubr.msk.f32.vlgmr.msra.gmra.mxu0 %vm78_vm0, %v57_v6 }
   0xb   :  { %2922 = vmatpush3.msra.mxu1 %v60_v1 }
   0xc   :  { %2923 = vmatprep.subr.mxu1 %v59_v4 }
   0xd   :  { %2924 = vmatpush3.msra.mxu1 %v59_v4 }
   0xe   :  { %22 = vsyncpa [#allocation3], 0  ;;  %2925 = vmatprep.subr.mxu1 %v58_v7  ;;  %161 = vmatprep.mubr.f32.mxu0 %v3261_v8  ;;  %v181_v10 = vld [vmem:[%s4118_s29 + $0x8] sm:$0xff]  ;;  %v182_v11 = vld [vmem:[%s4118_s29 + $0x10] sm:$0xff]  ;;  %v68_v63 = vlaneseq  ;;  %vm3262_vm2 = vmmov 0   ;;  %vm1922_vm3 = vcmask 64512  }
   0xf   :  { %2926 = vmatpush3.msra.mxu1 %v58_v7  ;;  %2929 = vmatprep.mubr.msk.f32.mxu1 %vm184_vm1, %v180_v9  ;;  %v183_v12 = vld [vmem:[%s4118_s29 + $0x18] sm:$0xff]  ;;  %v2549_v13 = vld [vmem:[%s4118_s29 + $0x20] sm:$0xff]  ;;  %v2550_v14 = vld [vmem:[%s4118_s29 + $0x28] sm:$0xff] }
  0x10   :  { %2927 = vmatprep.subr.mxu1 %v57_v6  ;;  %2935 = vmatprep.subr.mxu0 %v60_v1  ;;  %v2551_v15 = vld [vmem:[%s4118_s29 + $0x30] sm:$0xff]  ;;  %v2552_v16 = vld [vmem:[%s4118_s29 + $0x38] sm:$0xff]  ;;  %v283_v19 = vld [vmem:[%s4097_s2 + $0x8] sm:$0xff] }
  0x11   :  { %2928 = vmatpush3.msra.mxu1 %v57_v6  ;;  %2538 = vmatmul.mubr.msk.f32.gmra.mxu0 %vm78_vm0, %v58_v7  ;;  %v285_v17 = vld [vmem:[%s4097_s2 + $0x18] sm:$0xff]  ;;  %v284_v18 = vld [vmem:[%s4097_s2 + $0x10] sm:$0xff]  ;;  %v282_v20 = vld [vmem:[%s4097_s2] sm:$0xff] }
  0x12   :  { %2930 = vmatmul.mubr.msk.f32.vlgmr.msra.gmra.mxu1 %vm184_vm1, %v181_v10  ;;  %167 = vmatprep.mubr.f32.mxu0 %v3261_v8  ;;  %v2560_v21 = vld [vmem:[%s4097_s2 + $0x58] sm:$0xff]  ;;  %v2559_v22 = vld [vmem:[%s4097_s2 + $0x50] sm:$0xff]  ;;  %v2558_v23 = vld [vmem:[%s4097_s2 + $0x48] sm:$0xff] }
  0x13   :  { %2936 = vmatpush3.msra.mxu0 %v60_v1  ;;  %2932 = vmatprep.mubr.msk.f32.mxu1 %vm184_vm1, %v182_v11  ;;  %v2557_v24 = vld [vmem:[%s4097_s2 + $0x40] sm:$0xff]  ;;  %v825_v41 = vld [vmem:[%s4100_s5 + $0xf8] sm:$0xff]  ;;  %v824_v43 = vld [vmem:[%s4100_s5 + $0xf0] sm:$0xff] }
  0x14   :  { %2937 = vmatprep.subr.mxu0 %v59_v4  ;;  %326 = vmatprep.subr.mxu1 %v285_v17  ;;  %v809_v42 = vld [vmem:[%s4100_s5 + $0x78] sm:$0xff]  ;;  %v808_v44 = vld [vmem:[%s4100_s5 + $0x70] sm:$0xff]  ;;  %v823_v45 = vld [vmem:[%s4100_s5 + $0xe8] sm:$0xff] }
  0x15   :  { %2539 = vmatmul.mubr.msk.f32.gmra.mxu0 %vm78_vm0, %v59_v4  ;;  %327 = vmatpush1.msra.mxu1 %v284_v18  ;;  %v807_v46 = vld [vmem:[%s4100_s5 + $0x68] sm:$0xff]  ;;  %v822_v47 = vld [vmem:[%s4100_s5 + $0xe0] sm:$0xff]  ;;  %v821_v49 = vld [vmem:[%s4100_s5 + $0xd8] sm:$0xff] }
  0x16   :  { %173 = vmatprep.mubr.f32.mxu0 %v3261_v8  ;;  %2938 = vmatpush3.msra.mxu0 %v59_v4  ;;  %v806_v48 = vld [vmem:[%s4100_s5 + $0x60] sm:$0xff]  ;;  %v805_v50 = vld [vmem:[%s4100_s5 + $0x58] sm:$0xff]  ;;  %v820_v51 = vld [vmem:[%s4100_s5 + $0xd0] sm:$0xff] }
  0x17   :  { %2933 = vmatmul.mubr.msk.f32.gmra.mxu1 %vm184_vm1, %v183_v12  ;;  %2939 = vmatprep.subr.mxu0 %v58_v7  ;;  %v804_v52 = vld [vmem:[%s4100_s5 + $0x50] sm:$0xff]  ;;  %v819_v53 = vld [vmem:[%s4100_s5 + $0xc8] sm:$0xff]  ;;  %v818_v55 = vld [vmem:[%s4100_s5 + $0xc0] sm:$0xff] }
  0x18   :  { %2940 = vmatpush3.msra.mxu0 %v58_v7  ;;  %362 = vmatprep.mubr.f32.mxu1 %v3261_v8  ;;  %v803_v54 = vld [vmem:[%s4100_s5 + $0x48] sm:$0xff]  ;;  %v802_v56 = vld [vmem:[%s4100_s5 + $0x40] sm:$0xff]  ;;  %v817_v57 = vld [vmem:[%s4100_s5 + $0xb8] sm:$0xff] }
  0x19   :  { %2540 = vmatmul.mubr.msk.f32.gmra.mxu0 %vm78_vm0, %v60_v1  ;;  %2941 = vmatprep.subr.mxu0 %v57_v6  ;;  %v801_v58 = vld [vmem:[%s4100_s5 + $0x38] sm:$0xff]  ;;  %v69_v1 = vshrl.u32 %v68_v63, 7  ;;  %v66_v7 = vld [vmem:[%s4098_s3] sm:$0x3] }
  0x1a   :  { %2942 = vmatpush3.msra.mxu0 %v57_v6  ;;  %2943 = vmatprep.mubr.msk.f32.mxu0 %vm184_vm1, %v2549_v13  ;;  %v2598_v63 = vld [vmem:[%s4100_s5 + $0x1d8] sm:$0xff] }
  0x1b   :  { %328 = vmatprep.subr.mxu1 %v283_v19  ;;  %542 = vmatprep.subr.mxu0 %v2560_v21  ;;  %v70_v5 = vsub.s32 0, %v69_v1  ;;  %v74_v9 = vsub.s32 1, %v69_v1  ;;  %v2597_v1 = vld [vmem:[%s4100_s5 + $0x1d0] sm:$0xff] }
  0x1c   :  { %329 = vmatpush1.msra.mxu1 %v282_v20 }
  0x1d   :  { %2944 = vmatmul.mubr.msk.f32.vlgmr.msra.gmra.mxu0 %vm184_vm1, %v2550_v14  ;;  %v71_v12 = vrot.slane %v66_v7, %v70_v5  ;;  %v75_v14 = vrot.slane %v66_v7, %v74_v9  ;;  %v2595_v5 = vld [vmem:[%s4100_s5 + $0x1c0] sm:$0xff]  ;;  %v2594_v7 = vld [vmem:[%s4100_s5 + $0x1b8] sm:$0xff] }
  0x1e   :  { %2946 = vmatprep.mubr.msk.f32.mxu0 %vm184_vm1, %v2551_v15  ;;  %543 = vmatpush1.msra.mxu0 %v2559_v22  ;;  %v2578_v9 = vld [vmem:[%s4100_s5 + $0x138] sm:$0xff] }
  0x1f   :  { %544 = vmatprep.subr.mxu0 %v2558_v23 }
  0x20   :  { %545 = vmatpush1.msra.mxu0 %v2557_v24 }
  0x21   :  { %2947 = vmatmul.mubr.msk.f32.gmra.mxu0 %vm184_vm1, %v2552_v16  ;;  %2707 = vmatprep.subr.mxu0 %v825_v41 }
  0x22   :  { %578 = vmatprep.mubr.f32.mxu0 %v3261_v8 }
  0xca   :  { %v3446_v25 = vpop.f32.mrf.mxu0 }
  0xcc   :  { %v3448_v26 = vpop.f32.mrf.mxu0 }
  0xd1   :  { %v3450_v27 = vpop.f32.mrf.mxu0 }
  0xd2   :  { %v2931_v28 = vpop.f32.mrf.mxu1 }
  0xd3   :  { %v3452_v29 = vpop.f32.mrf.mxu0 }
  0xd4   :  { %v263_v30 = vpop.f32.mrf.mxu1  ;;  %v166_v23 = vadd.f32 %v3452_v29, %v75_v14 }
  0xd5   :  { %2545 = vmatmul.mubr.msk.f32.vlgmr.msra.gmra.mxu1 %vm78_vm0, %v263_v30  ;;  %v3455_v31 = vpop.f32.mrf.mxu0  ;;  %v164_v30 = vadd.f32 %v3450_v27, %v71_v12 }
  0xd6   :  { %368 = vmatprep.mubr.f32.mxu1 %v3261_v8  ;;  %v170_v20 = vadd.f32 %v3455_v31, %v71_v12 }
  0xd7   :  { %v3458_v32 = vpop.f32.mrf.mxu0  ;;  %v2934_v33 = vpop.f32.mrf.mxu1 }
  0xd8   :  { %v172_v18 = vadd.f32 %v3458_v32, %v75_v14 }
  0xd9   :  { %2546 = vmatmul.mubr.msk.f32.gmra.mxu1 %vm78_vm0, %v2931_v28  ;;  %v3461_v34 = vpop.f32.mrf.mxu0  ;;  %v273_v35 = vpop.f32.mrf.mxu1 }
  0xda   :  { %374 = vmatprep.mubr.f32.mxu1 %v3261_v8  ;;  %v176_v15 = vadd.f32 %v3461_v34, %v71_v12  ;;  %v160_v34 = vadd.f32 %v3448_v26, %v75_v14 }
  0xdb   :  { %v3464_v36 = vpop.f32.mrf.mxu0 }
  0xdc   :  { %v178_v19 = vadd.f32 %v3464_v36, %v75_v14  ;;  %v158_v36 = vadd.f32 %v3446_v25, %v71_v12  ;;  %v800_v12 = vld [vmem:[%s4100_s5 + $0x30] sm:$0xff]  ;;  %v815_v14 = vld [vmem:[%s4100_s5 + $0xa8] sm:$0xff] }
  0xdd   :  { %2547 = vmatmul.mubr.msk.f32.gmra.mxu1 %vm78_vm0, %v273_v35  ;;  %v2945_v37 = vpop.f32.mrf.mxu0 }
  0xde   :  { %380 = vmatprep.mubr.f32.mxu1 %v3261_v8 }
  0xdf   :  { %v478_v38 = vpop.f32.mrf.mxu0 }
  0xe0   :  { %2561 = vmatmul.mubr.msk.f32.vlgmr.msra.gmra.mxu0 %vm78_vm0, %v478_v38 }
  0xe1   :  { %2548 = vmatmul.mubr.msk.f32.gmra.mxu1 %vm78_vm0, %v2934_v33  ;;  %584 = vmatprep.mubr.f32.mxu0 %v3261_v8  ;;  %v2948_v39 = vpop.f32.mrf.mxu0 }
  0xe2   :  { %691 = vmatprep.mubr.f32.mxu1 %v3261_v8  ;;  %2708 = vmatpush3.msra.mxu0 %v809_v42 }
  0xe3   :  { %v488_v40 = vpop.f32.mrf.mxu0  ;;  %2709 = vmatprep.subr.mxu0 %v824_v43 }
  0xe4   :  { %2562 = vmatmul.mubr.msk.f32.gmra.mxu0 %vm78_vm0, %v2945_v37 }
  0xe5   :  { %590 = vmatprep.mubr.f32.mxu0 %v3261_v8  ;;  %2710 = vmatpush3.msra.mxu0 %v808_v44 }
  0xe6   :  { %2711 = vmatprep.subr.mxu0 %v823_v45 }
  0xe7   :  { %2712 = vmatpush3.msra.mxu0 %v807_v46 }
  0xe8   :  { %2563 = vmatmul.mubr.msk.f32.gmra.mxu0 %vm78_vm0, %v488_v40  ;;  %2713 = vmatprep.subr.mxu0 %v822_v47 }
  0xe9   :  { %596 = vmatprep.mubr.f32.mxu0 %v3261_v8  ;;  %2714 = vmatpush3.msra.mxu0 %v806_v48 }
  0xea   :  { %2715 = vmatprep.subr.mxu0 %v821_v49 }
  0xeb   :  { %2716 = vmatpush3.msra.mxu0 %v805_v50 }
  0xec   :  { %2564 = vmatmul.mubr.msk.f32.gmra.mxu0 %vm78_vm0, %v2948_v39  ;;  %2717 = vmatprep.subr.mxu0 %v820_v51  ;;  %v619_v51 = vld [vmem:[%s4099_s4] sm:$0xff] }
  0xed   :  { %2718 = vmatpush3.msra.mxu0 %v804_v52  ;;  %v620_v52 = vld [vmem:[%s4099_s4 + $0x8] sm:$0xff] }
  0xee   :  { %2719 = vmatprep.subr.mxu0 %v819_v53  ;;  %v2567_v53 = vld [vmem:[%s4099_s4 + $0x10] sm:$0xff] }
  0xef   :  { %2720 = vmatpush3.msra.mxu0 %v803_v54  ;;  %v2602_v54 = vld [vmem:[%s4100_s5 + $0x1f8] sm:$0xff] }
  0xf0   :  { %2721 = vmatprep.subr.mxu0 %v818_v55  ;;  %v2586_v55 = vld [vmem:[%s4100_s5 + $0x178] sm:$0xff] }
  0xf1   :  { %2722 = vmatpush3.msra.mxu0 %v802_v56  ;;  %v2601_v56 = vld [vmem:[%s4100_s5 + $0x1f0] sm:$0xff] }
  0xf2   :  { %2723 = vmatprep.subr.mxu0 %v817_v57  ;;  %v2585_v57 = vld [vmem:[%s4100_s5 + $0x170] sm:$0xff] }
  0xf3   :  { %2724 = vmatpush3.msra.mxu0 %v801_v58  ;;  %v2568_v58 = vld [vmem:[%s4099_s4 + $0x18] sm:$0xff] }
 0x195   :  { %v364_v59 = vpop.f32.mrf.mxu1 }
 0x196   :  { %v387_v29 = vadd.f32 %v364_v59, %v158_v36  ;;  %v2600_v59 = vld [vmem:[%s4100_s5 + $0x1e8] sm:$0xff]  ;;  %v810_v36 = vld [vmem:[%s4100_s5 + $0x80] sm:$0xff] }
 0x197   :  { %v366_v60 = vpop.f32.mrf.mxu1 }
 0x198   :  { %v388_v41 = vadd.f32 %v366_v60, %v160_v34  ;;  %v2584_v60 = vld [vmem:[%s4100_s5 + $0x168] sm:$0xff] }
 0x199   :  { %v370_v61 = vpop.f32.mrf.mxu1  ;;  %v811_v34 = vld [vmem:[%s4100_s5 + $0x88] sm:$0xff] }
 0x19a   :  { %v389_v40 = vadd.f32 %v370_v61, %v164_v30  ;;  %v2599_v61 = vld [vmem:[%s4100_s5 + $0x1e0] sm:$0xff]  ;;  %v812_v30 = vld [vmem:[%s4100_s5 + $0x90] sm:$0xff] }
 0x19b   :  { %v372_v62 = vpop.f32.mrf.mxu1 }
 0x19c   :  { %v390_v38 = vadd.f32 %v372_v62, %v166_v23  ;;  %v2583_v62 = vld [vmem:[%s4100_s5 + $0x160] sm:$0xff]  ;;  %v2590_v23 = vld [vmem:[%s4100_s5 + $0x198] sm:$0xff] }
 0x19d   :  { %v376_v0 = vpop.f32.mrf.mxu1 }
 0x19e   :  { %v391_v33 = vadd.f32 %v376_v0, %v170_v20  ;;  %v2582_v0 = vld [vmem:[%s4100_s5 + $0x158] sm:$0xff]  ;;  %v798_v20 = vld [vmem:[%s4100_s5 + $0x20] sm:$0xff] }
 0x19f   :  { %v378_v3 = vpop.f32.mrf.mxu1 }
 0x1a0   :  { %v580_v2 = vpop.f32.mrf.mxu0  ;;  %v392_v24 = vadd.f32 %v378_v3, %v172_v18  ;;  %v2596_v3 = vld [vmem:[%s4100_s5 + $0x1c8] sm:$0xff]  ;;  %v814_v18 = vld [vmem:[%s4100_s5 + $0xa0] sm:$0xff] }
 0x1a1   :  { %v382_v10 = vpop.f32.mrf.mxu1  ;;  %v603_v47 = vadd.f32 %v580_v2, %v387_v29  ;;  %v2581_v2 = vld [vmem:[%s4100_s5 + $0x150] sm:$0xff] }
 0x1a2   :  { %v582_v4 = vpop.f32.mrf.mxu0  ;;  %v393_v21 = vadd.f32 %v382_v10, %v176_v15  ;;  %v816_v10 = vld [vmem:[%s4100_s5 + $0xb0] sm:$0xff]  ;;  %v2592_v15 = vld [vmem:[%s4100_s5 + $0x1a8] sm:$0xff] }
 0x1a3   :  { %v384_v16 = vpop.f32.mrf.mxu1  ;;  %v604_v46 = vadd.f32 %v582_v4, %v388_v41  ;;  %v611_v25 = vmax.f32 %v603_v47, 0.0  ;;  %v2580_v4 = vld [vmem:[%s4100_s5 + $0x148] sm:$0xff]  ;;  %2725 = vmatprep.subr.mxu0 %v816_v10  ;;  %v2571_v41 = vld [vmem:[%s4100_s5 + $0x100] sm:$0xff] }
 0x1a4   :  { %v586_v6 = vpop.f32.mrf.mxu0  ;;  %v394_v28 = vadd.f32 %v384_v16, %v178_v19  ;;  %2726 = vmatpush3.msra.mxu0 %v800_v12  ;;  %v799_v16 = vld [vmem:[%s4100_s5 + $0x28] sm:$0xff]  ;;  %v2591_v19 = vld [vmem:[%s4100_s5 + $0x1a0] sm:$0xff] }
 0x1a5   :  { %v605_v44 = vadd.f32 %v586_v6, %v389_v40  ;;  %v612_v50 = vmax.f32 %v604_v46, 0.0  ;;  %v2579_v6 = vld [vmem:[%s4100_s5 + $0x140] sm:$0xff]  ;;  %2727 = vmatprep.subr.mxu0 %v815_v14 }
 0x1a6   :  { %v588_v11 = vpop.f32.mrf.mxu0  ;;  %2728 = vmatpush3.msra.mxu0 %v799_v16  ;;  %v2587_v40 = vld [vmem:[%s4100_s5 + $0x180] sm:$0xff] }
 0x1a7   :  { %v606_v42 = vadd.f32 %v588_v11, %v390_v38  ;;  %v613_v49 = vmax.f32 %v605_v44, 0.0  ;;  %v2593_v11 = vld [vmem:[%s4100_s5 + $0x1b0] sm:$0xff]  ;;  %2729 = vmatprep.subr.mxu0 %v814_v18  ;;  %v2588_v38 = vld [vmem:[%s4100_s5 + $0x188] sm:$0xff] }
 0x1a8   :  { %v592_v13 = vpop.f32.mrf.mxu0  ;;  %2730 = vmatpush3.msra.mxu0 %v798_v20  ;;  %v1111_v18 = vld [vmem:[%s4101_s6 + $0x8] sm:$0xff]  ;;  %v1208_v20 = vld [vmem:[%s4102_s7 + $0x78] sm:$0xff] }
 0x1a9   :  { %v607_v31 = vadd.f32 %v592_v13, %v391_v33  ;;  %v614_v26 = vmax.f32 %v606_v42, 0.0  ;;  %v2577_v13 = vld [vmem:[%s4100_s5 + $0x130] sm:$0xff]  ;;  %v2618_v42 = vld [vmem:[%s4102_s7 + $0xf8] sm:$0xff] }
 0x1aa   :  { %v594_v17 = vpop.f32.mrf.mxu0  ;;  %v2589_v33 = vld [vmem:[%s4100_s5 + $0x190] sm:$0xff] }
 0x1ab   :  { %v608_v39 = vadd.f32 %v594_v17, %v392_v24  ;;  %v615_v48 = vmax.f32 %v607_v31, 0.0  ;;  %v2576_v17 = vld [vmem:[%s4100_s5 + $0x128] sm:$0xff]  ;;  %v797_v24 = vld [vmem:[%s4100_s5 + $0x18] sm:$0xff]  ;;  %v794_v31 = vld [vmem:[%s4100_s5] sm:$0xff] }
 0x1ac   :  { %v598_v22 = vpop.f32.mrf.mxu0 }
 0x1ad   :  { %v609_v35 = vadd.f32 %v598_v22, %v393_v21  ;;  %v616_v27 = vmax.f32 %v608_v39, 0.0  ;;  %v2575_v21 = vld [vmem:[%s4100_s5 + $0x120] sm:$0xff]  ;;  %v813_v22 = vld [vmem:[%s4100_s5 + $0x98] sm:$0xff]  ;;  %v795_v39 = vld [vmem:[%s4100_s5 + $0x8] sm:$0xff] }
 0x1ae   :  { %v600_v37 = vpop.f32.mrf.mxu0  ;;  %2731 = vmatprep.subr.mxu0 %v813_v22  ;;  %v1207_v22 = vld [vmem:[%s4102_s7 + $0x70] sm:$0xff] }
 0x1af   :  { %v610_v32 = vadd.f32 %v600_v37, %v394_v28  ;;  %v617_v45 = vmax.f32 %v609_v35, 0.0  ;;  %v2574_v28 = vld [vmem:[%s4100_s5 + $0x118] sm:$0xff]  ;;  %2732 = vmatpush3.msra.mxu0 %v797_v24  ;;  %v796_v35 = vld [vmem:[%s4100_s5 + $0x10] sm:$0xff]  ;;  %v1206_v24 = vld [vmem:[%s4102_s7 + $0x68] sm:$0xff] }
 0x1b0   :  { %2733 = vmatprep.subr.mxu0 %v812_v30  ;;  %v2573_v37 = vld [vmem:[%s4100_s5 + $0x110] sm:$0xff]  ;;  %v1205_v30 = vld [vmem:[%s4102_s7 + $0x60] sm:$0xff] }
 0x1b1   :  { %v618_v43 = vmax.f32 %v610_v32, 0.0  ;;  %2734 = vmatpush3.msra.mxu0 %v796_v35  ;;  %v2572_v32 = vld [vmem:[%s4100_s5 + $0x108] sm:$0xff]  ;;  %v1204_v35 = vld [vmem:[%s4102_s7 + $0x58] sm:$0xff] }
 0x1b2   :  { %2735 = vmatprep.subr.mxu0 %v811_v34  ;;  %v1203_v34 = vld [vmem:[%s4102_s7 + $0x50] sm:$0xff] }
 0x1b3   :  { %651 = vmatprep.subr.mxu1 %v618_v43  ;;  %2736 = vmatpush3.msra.mxu0 %v795_v39  ;;  %v1202_v39 = vld [vmem:[%s4102_s7 + $0x48] sm:$0xff] }
 0x1b4   :  { %652 = vmatpush1.msra.mxu1 %v617_v45  ;;  %2737 = vmatprep.subr.mxu0 %v810_v36  ;;  %v1201_v36 = vld [vmem:[%s4102_s7 + $0x40] sm:$0xff] }
 0x1b5   :  { %653 = vmatprep.subr.mxu1 %v616_v27  ;;  %2738 = vmatpush3.msra.mxu0 %v794_v31  ;;  %v1200_v31 = vld [vmem:[%s4102_s7 + $0x38] sm:$0xff] }
 0x1b6   :  { %654 = vmatpush1.msra.mxu1 %v615_v48  ;;  %2949 = vmatprep.subr.mxu0 %v2618_v42 }
 0x1b7   :  { %655 = vmatprep.subr.mxu1 %v614_v26 }
 0x1b8   :  { %656 = vmatpush1.msra.mxu1 %v613_v49 }
 0x1b9   :  { %657 = vmatprep.subr.mxu1 %v612_v50 }
 0x1ba   :  { %658 = vmatpush1.msra.mxu1 %v611_v25 }
 0x1bb   :  { %2565 = vmatmul.mubr.msk.f32.vlgmr.msra.gmra.mxu1 %vm184_vm1, %v619_v51  ;;  %737 = vmatprep.subr.mxu1 %v618_v43 }
 0x1bc   :  { %738 = vmatpush1.msra.mxu1 %v617_v45  ;;  %697 = vmatprep.mubr.f32.mxu1 %v3261_v8 }
 0x1bd   :  { %739 = vmatprep.subr.mxu1 %v616_v27 }
 0x1be   :  { %740 = vmatpush1.msra.mxu1 %v615_v48 }
 0x1bf   :  { %2566 = vmatmul.mubr.msk.f32.gmra.mxu1 %vm184_vm1, %v620_v52  ;;  %741 = vmatprep.subr.mxu1 %v614_v26  ;;  %v2616_v52 = vld [vmem:[%s4102_s7 + $0xe8] sm:$0xff] }
 0x1c0   :  { %742 = vmatpush1.msra.mxu1 %v613_v49  ;;  %777 = vmatprep.mubr.f32.mxu1 %v3261_v8  ;;  %v2617_v49 = vld [vmem:[%s4102_s7 + $0xf0] sm:$0xff] }
 0x1c1   :  { %743 = vmatprep.subr.mxu1 %v612_v50 }
 0x1c2   :  { %744 = vmatpush1.msra.mxu1 %v611_v25 }
 0x1c3   :  { %2569 = vmatmul.mubr.msk.f32.vlgmr.msra.gmra.mxu1 %vm184_vm1, %v2567_v53  ;;  %2745 = vmatprep.subr.mxu1 %v2602_v54  ;;  %v2615_v53 = vld [vmem:[%s4102_s7 + $0xe0] sm:$0xff]  ;;  %v2614_v54 = vld [vmem:[%s4102_s7 + $0xd8] sm:$0xff] }
 0x1c4   :  { %783 = vmatprep.mubr.f32.mxu1 %v3261_v8  ;;  %2746 = vmatpush3.msra.mxu1 %v2586_v55  ;;  %v2613_v55 = vld [vmem:[%s4102_s7 + $0xd0] sm:$0xff] }
 0x1c5   :  { %2747 = vmatprep.subr.mxu1 %v2601_v56  ;;  %v2612_v56 = vld [vmem:[%s4102_s7 + $0xc8] sm:$0xff] }
 0x1c6   :  { %2748 = vmatpush3.msra.mxu1 %v2585_v57  ;;  %v2611_v57 = vld [vmem:[%s4102_s7 + $0xc0] sm:$0xff] }
 0x1c7   :  { %2570 = vmatmul.mubr.msk.f32.gmra.mxu1 %vm184_vm1, %v2568_v58  ;;  %2749 = vmatprep.subr.mxu1 %v2600_v59  ;;  %v2610_v58 = vld [vmem:[%s4102_s7 + $0xb8] sm:$0xff]  ;;  %v2609_v59 = vld [vmem:[%s4102_s7 + $0xb0] sm:$0xff] }
 0x1c8   :  { %2750 = vmatpush3.msra.mxu1 %v2584_v60  ;;  %v2608_v60 = vld [vmem:[%s4102_s7 + $0xa8] sm:$0xff] }
 0x1c9   :  { %2751 = vmatprep.subr.mxu1 %v2599_v61  ;;  %v2607_v61 = vld [vmem:[%s4102_s7 + $0xa0] sm:$0xff] }
 0x1ca   :  { %2752 = vmatpush3.msra.mxu1 %v2583_v62  ;;  %v2606_v62 = vld [vmem:[%s4102_s7 + $0x98] sm:$0xff] }
 0x1cb   :  { %2753 = vmatprep.subr.mxu1 %v2598_v63  ;;  %v2605_v63 = vld [vmem:[%s4102_s7 + $0x90] sm:$0xff] }
 0x1cc   :  { %2754 = vmatpush3.msra.mxu1 %v2582_v0  ;;  %v2604_v0 = vld [vmem:[%s4102_s7 + $0x88] sm:$0xff] }
 0x1cd   :  { %2755 = vmatprep.subr.mxu1 %v2597_v1  ;;  %v2603_v1 = vld [vmem:[%s4102_s7 + $0x80] sm:$0xff] }
 0x1ce   :  { %2756 = vmatpush3.msra.mxu1 %v2581_v2  ;;  %v1110_v2 = vld [vmem:[%s4101_s6] sm:$0xff] }
 0x1cf   :  { %2757 = vmatprep.subr.mxu1 %v2596_v3 }
 0x1d0   :  { %2758 = vmatpush3.msra.mxu1 %v2580_v4 }
 0x1d1   :  { %2759 = vmatprep.subr.mxu1 %v2595_v5 }
 0x1d2   :  { %2760 = vmatpush3.msra.mxu1 %v2579_v6 }
 0x1d3   :  { %2761 = vmatprep.subr.mxu1 %v2594_v7 }
 0x1d4   :  { %2762 = vmatpush3.msra.mxu1 %v2578_v9 }
 0x1d5   :  { %2763 = vmatprep.subr.mxu1 %v2593_v11 }
 0x1d6   :  { %2764 = vmatpush3.msra.mxu1 %v2577_v13 }
 0x1d7   :  { %2765 = vmatprep.subr.mxu1 %v2592_v15 }
 0x1d8   :  { %2766 = vmatpush3.msra.mxu1 %v2576_v17 }
 0x1d9   :  { %2767 = vmatprep.subr.mxu1 %v2591_v19  ;;  %v2622_v19 = vld [vmem:[%s4101_s6 + $0x10] sm:$0xff] }
 0x1da   :  { %2768 = vmatpush3.msra.mxu1 %v2575_v21  ;;  %v2623_v21 = vld [vmem:[%s4101_s6 + $0x18] sm:$0xff] }
 0x1db   :  { %2769 = vmatprep.subr.mxu1 %v2590_v23  ;;  %v2641_v23 = vld [vmem:[%s4102_s7 + $0x178] sm:$0xff] }
 0x1dc   :  { %2770 = vmatpush3.msra.mxu1 %v2574_v28  ;;  %v2640_v28 = vld [vmem:[%s4102_s7 + $0x170] sm:$0xff] }
 0x1dd   :  { %2771 = vmatprep.subr.mxu1 %v2589_v33  ;;  %v2639_v33 = vld [vmem:[%s4102_s7 + $0x168] sm:$0xff] }
 0x1de   :  { %2772 = vmatpush3.msra.mxu1 %v2573_v37  ;;  %v2638_v37 = vld [vmem:[%s4102_s7 + $0x160] sm:$0xff] }
 0x1df   :  { %2773 = vmatprep.subr.mxu1 %v2588_v38  ;;  %v2637_v38 = vld [vmem:[%s4102_s7 + $0x158] sm:$0xff] }
 0x1e0   :  { %2774 = vmatpush3.msra.mxu1 %v2572_v32  ;;  %v2636_v32 = vld [vmem:[%s4102_s7 + $0x150] sm:$0xff] }
 0x1e1   :  { %2775 = vmatprep.subr.mxu1 %v2587_v40  ;;  %v2635_v40 = vld [vmem:[%s4102_s7 + $0x148] sm:$0xff] }
 0x1e2   :  { %2776 = vmatpush3.msra.mxu1 %v2571_v41  ;;  %v2634_v41 = vld [vmem:[%s4102_s7 + $0x140] sm:$0xff] }
 0x27b   :  { %v693_v43 = vpop.f32.mrf.mxu1 }
 0x27d   :  { %v695_v29 = vpop.f32.mrf.mxu1 }
 0x27f   :  { %v699_v44 = vpop.f32.mrf.mxu1 }
 0x281   :  { %v701_v45 = vpop.f32.mrf.mxu1 }
 0x283   :  { %v779_v46 = vpop.f32.mrf.mxu1 }
 0x284   :  { %v790_v48 = vmax.f32 %v693_v43, %v779_v46  ;;  %v2633_v43 = vld [vmem:[%s4102_s7 + $0x138] sm:$0xff]  ;;  %v2631_v46 = vld [vmem:[%s4102_s7 + $0x128] sm:$0xff] }
 0x285   :  { %v781_v27 = vpop.f32.mrf.mxu1 }
 0x286   :  { %v791_v47 = vmax.f32 %v695_v29, %v781_v27  ;;  %v1198_v29 = vld [vmem:[%s4102_s7 + $0x28] sm:$0xff]  ;;  %v2630_v27 = vld [vmem:[%s4102_s7 + $0x120] sm:$0xff] }
 0x287   :  { %v785_v26 = vpop.f32.mrf.mxu1 }
 0x288   :  { %890 = vmatprep.mubr.f32.mxu0 %v791_v47  ;;  %998 = vmatprep.mubr.f32.mxu1 %v791_v47  ;;  %v792_v51 = vmax.f32 %v699_v44, %v785_v26  ;;  %v2632_v44 = vld [vmem:[%s4102_s7 + $0x130] sm:$0xff]  ;;  %v1196_v47 = vld [vmem:[%s4102_s7 + $0x18] sm:$0xff] }
 0x289   :  { %v787_v50 = vpop.f32.mrf.mxu1  ;;  %891 = vmatmul.mubr.f32.vlgmr.msra.gmra.mxu0 %v790_v48  ;;  %999 = vmatmul.mubr.f32.vlgmr.msra.gmra.mxu1 %v790_v48  ;;  %v2629_v48 = vld [vmem:[%s4102_s7 + $0x118] sm:$0xff]  ;;  %v1195_v26 = vld [vmem:[%s4102_s7 + $0x10] sm:$0xff] }
 0x28a   :  { %v793_v25 = vmax.f32 %v701_v45, %v787_v50  ;;  %2950 = vmatpush3.msra.mxu0 %v2618_v42  ;;  %v1199_v42 = vld [vmem:[%s4102_s7 + $0x30] sm:$0xff]  ;;  %v1197_v45 = vld [vmem:[%s4102_s7 + $0x20] sm:$0xff]  ;;  %v1194_v50 = vld [vmem:[%s4102_s7 + $0x8] sm:$0xff] }
 0x28b   :  { %2951 = vmatprep.subr.mxu0 %v2617_v49 }
 0x28c   :  { %895 = vmatprep.mubr.f32.mxu0 %v793_v25  ;;  %1003 = vmatprep.mubr.f32.mxu1 %v793_v25  ;;  %v2627_v25 = vld [vmem:[%s4102_s7 + $0x108] sm:$0xff] }
 0x28d   :  { %896 = vmatmul.mubr.f32.gmra.mxu0 %v792_v51  ;;  %1004 = vmatmul.mubr.f32.gmra.mxu1 %v792_v51  ;;  %v1193_v51 = vld [vmem:[%s4102_s7] sm:$0xff] }
 0x28e   :  { %2952 = vmatpush3.msra.mxu0 %v2617_v49  ;;  %2988 = vmatprep.mubr.msk.f32.mxu1 %vm78_vm0, %v1110_v2  ;;  %v2628_v49 = vld [vmem:[%s4102_s7 + $0x110] sm:$0xff] }
 0x28f   :  { %2953 = vmatprep.subr.mxu0 %v2616_v52 }
 0x290   :  { %2954 = vmatpush3.msra.mxu0 %v2616_v52  ;;  %v2626_v52 = vld [vmem:[%s4102_s7 + $0x100] sm:$0xff] }
 0x291   :  { %2955 = vmatprep.subr.mxu0 %v2615_v53 }
 0x292   :  { %2956 = vmatpush3.msra.mxu0 %v2615_v53 }
 0x293   :  { %2957 = vmatprep.subr.mxu0 %v2614_v54 }
 0x294   :  { %2958 = vmatpush3.msra.mxu0 %v2614_v54 }
 0x295   :  { %2959 = vmatprep.subr.mxu0 %v2613_v55 }
 0x296   :  { %2960 = vmatpush3.msra.mxu0 %v2613_v55 }
 0x297   :  { %2961 = vmatprep.subr.mxu0 %v2612_v56 }
 0x298   :  { %2962 = vmatpush3.msra.mxu0 %v2612_v56 }
 0x299   :  { %2963 = vmatprep.subr.mxu0 %v2611_v57 }
 0x29a   :  { %2964 = vmatpush3.msra.mxu0 %v2611_v57 }
 0x29b   :  { %2965 = vmatprep.subr.mxu0 %v2610_v58 }
 0x29c   :  { %2966 = vmatpush3.msra.mxu0 %v2610_v58 }
 0x29d   :  { %2967 = vmatprep.subr.mxu0 %v2609_v59 }
 0x29e   :  { %2968 = vmatpush3.msra.mxu0 %v2609_v59  ;;  %v2619_v59 = vld [vmem:[%s4103_s8] ss:$0 sm:$0xff] }
 0x29f   :  { %2969 = vmatprep.subr.mxu0 %v2608_v60 }
 0x2a0   :  { %2970 = vmatpush3.msra.mxu0 %v2608_v60 }
 0x2a1   :  { %2971 = vmatprep.subr.mxu0 %v2607_v61 }
 0x2a2   :  { %2972 = vmatpush3.msra.mxu0 %v2607_v61 }
 0x2a3   :  { %2973 = vmatprep.subr.mxu0 %v2606_v62 }
 0x2a4   :  { %2974 = vmatpush3.msra.mxu0 %v2606_v62 }
 0x2a5   :  { %2975 = vmatprep.subr.mxu0 %v2605_v63 }
 0x2a6   :  { %2976 = vmatpush3.msra.mxu0 %v2605_v63 }
 0x2a7   :  { %2977 = vmatprep.subr.mxu0 %v2604_v0 }
 0x2a8   :  { %2978 = vmatpush3.msra.mxu0 %v2604_v0 }
 0x2a9   :  { %2979 = vmatprep.subr.mxu0 %v2603_v1 }
 0x2aa   :  { %2980 = vmatpush3.msra.mxu0 %v2603_v1 }
 0x349   :  { %v2739_v3 = vpop.f32.mrf.mxu0  ;;  %v2777_v4 = vpop.f32.mrf.mxu1 }
 0x34b   :  { %v2740_v5 = vpop.f32.mrf.mxu0  ;;  %v2778_v6 = vpop.f32.mrf.mxu1 }
 0x34c   :  { %v2741_v7 = vadd.f32 %v2740_v5, %v2739_v3  ;;  %v2779_v9 = vadd.f32 %v2778_v6, %v2777_v4 }
 0x34d   :  { %v2742_v10 = vpop.f32.mrf.mxu0  ;;  %v2780_v11 = vpop.f32.mrf.mxu1 }
 0x34e   :  { %v1009_v12 = vmax.f32 %v2741_v7, %v2779_v9  ;;  %v1466_v9 = vld [vmem:[%s4104_s9] sm:$0xff] }
 0x34f   :  { %v2743_v13 = vpop.f32.mrf.mxu0  ;;  %v2781_v14 = vpop.f32.mrf.mxu1 }
 0x350   :  { %v2744_v15 = vadd.f32 %v2743_v13, %v2742_v10  ;;  %v2782_v16 = vadd.f32 %v2781_v14, %v2780_v11  ;;  %2981 = vmatprep.mubr.f32.mxu0 %v1009_v12  ;;  %v2643_v10 = vld [vmem:[%s4104_s9 + $0x8] sm:$0xff]  ;;  %v1619_v11 = vld [vmem:[%s4105_s10 + $0x18] sm:$0xff]  ;;  %v1618_v13 = vld [vmem:[%s4105_s10 + $0x10] sm:$0xff] }
 0x351   :  { %v2648_v14 = vld [vmem:[%s4105_s10 + $0x30] sm:$0xff] }
 0x352   :  { %v1010_v17 = vmax.f32 %v2744_v15, %v2782_v16  ;;  %v1617_v15 = vld [vmem:[%s4105_s10 + $0x8] sm:$0xff] }
 0x353   :  { %v2647_v16 = vld [vmem:[%s4105_s10 + $0x28] sm:$0xff] }
 0x354   :  { %2982 = vmatmul.mubr.f32.vlgmr.msra.gmra.mxu0 %v1010_v17  ;;  %2984 = vmatprep.subr.mxu1 %v1010_v17 }
 0x355   :  { %3026 = vmatprep.subr.mxu0 %v1010_v17  ;;  %2985 = vmatpush3.msra.mxu1 %v1010_v17 }
 0x356   :  { %3027 = vmatpush3.msra.mxu0 %v1010_v17  ;;  %2986 = vmatprep.subr.mxu1 %v1009_v12  ;;  %v1616_v17 = vld [vmem:[%s4105_s10] sm:$0xff] }
 0x357   :  { %3028 = vmatprep.subr.mxu0 %v1009_v12  ;;  %2987 = vmatpush3.msra.mxu1 %v1009_v12 }
 0x358   :  { %3029 = vmatpush3.msra.mxu0 %v1009_v12  ;;  %2989 = vmatmul.mubr.msk.f32.vlgmr.msra.gmra.mxu1 %vm78_vm0, %v1111_v18  ;;  %v2649_v12 = vld [vmem:[%s4105_s10 + $0x38] sm:$0xff]  ;;  %v2646_v18 = vld [vmem:[%s4105_s10 + $0x20] sm:$0xff] }
 0x359   :  { %3030 = vmatprep.mubr.msk.f32.mxu0 %vm78_vm0, %v2622_v19  ;;  %2991 = vmatprep.subr.mxu1 %v1208_v20 }
 0x35a   :  { %3031 = vmatmul.mubr.msk.f32.vlgmr.msra.gmra.mxu0 %vm78_vm0, %v2623_v21  ;;  %2992 = vmatpush3.msra.mxu1 %v1208_v20 }
 0x35b   :  { %2993 = vmatprep.subr.mxu1 %v1207_v22  ;;  %3033 = vmatprep.subr.mxu0 %v2641_v23 }
 0x35c   :  { %2994 = vmatpush3.msra.mxu1 %v1207_v22  ;;  %3034 = vmatpush3.msra.mxu0 %v2641_v23 }
 0x35d   :  { %2995 = vmatprep.subr.mxu1 %v1206_v24  ;;  %3035 = vmatprep.subr.mxu0 %v2640_v28 }
 0x35e   :  { %2996 = vmatpush3.msra.mxu1 %v1206_v24  ;;  %3036 = vmatpush3.msra.mxu0 %v2640_v28  ;;  %v1772_v24 = vld [vmem:[%s4106_s11 + $0x8] sm:$0xff]  ;;  %v1771_v28 = vld [vmem:[%s4106_s11] sm:$0xff] }
 0x35f   :  { %2997 = vmatprep.subr.mxu1 %v1205_v30  ;;  %3037 = vmatprep.subr.mxu0 %v2639_v33 }
 0x360   :  { %2998 = vmatpush3.msra.mxu1 %v1205_v30  ;;  %3038 = vmatpush3.msra.mxu0 %v2639_v33 }
 0x361   :  { %2999 = vmatprep.subr.mxu1 %v1204_v35  ;;  %3039 = vmatprep.subr.mxu0 %v2638_v37 }
 0x362   :  { %3000 = vmatpush3.msra.mxu1 %v1204_v35  ;;  %3040 = vmatpush3.msra.mxu0 %v2638_v37  ;;  %v2655_v37 = vld [vmem:[%s4106_s11 + $0x18] sm:$0xff] }
 0x363   :  { %3001 = vmatprep.subr.mxu1 %v1203_v34  ;;  %3041 = vmatprep.subr.mxu0 %v2637_v38 }
 0x364   :  { %3002 = vmatpush3.msra.mxu1 %v1203_v34  ;;  %3042 = vmatpush3.msra.mxu0 %v2637_v38 }
 0x365   :  { %3003 = vmatprep.subr.mxu1 %v1202_v39  ;;  %3043 = vmatprep.subr.mxu0 %v2636_v32 }
 0x366   :  { %3004 = vmatpush3.msra.mxu1 %v1202_v39  ;;  %3044 = vmatpush3.msra.mxu0 %v2636_v32  ;;  %v2654_v39 = vld [vmem:[%s4106_s11 + $0x10] sm:$0xff]  ;;  %v1769_v32 = vld [vmem:[%s4107_s12] sm:$0xff] }
 0x367   :  { %3005 = vmatprep.subr.mxu1 %v1201_v36  ;;  %3045 = vmatprep.subr.mxu0 %v2635_v40 }
 0x368   :  { %3006 = vmatpush3.msra.mxu1 %v1201_v36  ;;  %3046 = vmatpush3.msra.mxu0 %v2635_v40  ;;  %v2652_v36 = vld [vmem:[%s4107_s12 + $0x10] sm:$0xff] }
 0x369   :  { %3007 = vmatprep.subr.mxu1 %v1200_v31  ;;  %3047 = vmatprep.subr.mxu0 %v2634_v41 }
 0x36a   :  { %3008 = vmatpush3.msra.mxu1 %v1200_v31  ;;  %3048 = vmatpush3.msra.mxu0 %v2634_v41  ;;  %v2681_v31 = vld [vmem:[%s4109_s14 + $0xf8] sm:$0xff] }
 0x36b   :  { %3009 = vmatprep.subr.mxu1 %v1199_v42  ;;  %3049 = vmatprep.subr.mxu0 %v2633_v43 }
 0x36c   :  { %3010 = vmatpush3.msra.mxu1 %v1199_v42  ;;  %3050 = vmatpush3.msra.mxu0 %v2633_v43  ;;  %v2680_v42 = vld [vmem:[%s4109_s14 + $0xf0] sm:$0xff] }
 0x36d   :  { %3011 = vmatprep.subr.mxu1 %v1198_v29  ;;  %3051 = vmatprep.subr.mxu0 %v2632_v44 }
 0x36e   :  { %3012 = vmatpush3.msra.mxu1 %v1198_v29  ;;  %3052 = vmatpush3.msra.mxu0 %v2632_v44  ;;  %v2653_v29 = vld [vmem:[%s4107_s12 + $0x18] sm:$0xff] }
 0x36f   :  { %3013 = vmatprep.subr.mxu1 %v1197_v45  ;;  %3053 = vmatprep.subr.mxu0 %v2631_v46  ;;  %v2115_v44 = vld [vmem:[%s4109_s14 + $0x78] sm:$0xff] }
 0x370   :  { %3014 = vmatpush3.msra.mxu1 %v1197_v45  ;;  %3054 = vmatpush3.msra.mxu0 %v2631_v46  ;;  %v2679_v45 = vld [vmem:[%s4109_s14 + $0xe8] sm:$0xff] }
 0x371   :  { %3055 = vmatprep.subr.mxu0 %v2630_v27  ;;  %3015 = vmatprep.subr.mxu1 %v1196_v47 }
 0x372   :  { %3056 = vmatpush3.msra.mxu0 %v2630_v27  ;;  %3016 = vmatpush3.msra.mxu1 %v1196_v47  ;;  %v2114_v27 = vld [vmem:[%s4109_s14 + $0x70] sm:$0xff]  ;;  %v2678_v47 = vld [vmem:[%s4109_s14 + $0xe0] sm:$0xff] }
 0x373   :  { %3057 = vmatprep.subr.mxu0 %v2629_v48  ;;  %3017 = vmatprep.subr.mxu1 %v1195_v26 }
 0x374   :  { %3058 = vmatpush3.msra.mxu0 %v2629_v48  ;;  %3018 = vmatpush3.msra.mxu1 %v1195_v26  ;;  %v2113_v48 = vld [vmem:[%s4109_s14 + $0x68] sm:$0xff]  ;;  %v2677_v26 = vld [vmem:[%s4109_s14 + $0xd8] sm:$0xff] }
 0x375   :  { %3059 = vmatprep.subr.mxu0 %v2628_v49  ;;  %3019 = vmatprep.subr.mxu1 %v1194_v50 }
 0x376   :  { %3060 = vmatpush3.msra.mxu0 %v2628_v49  ;;  %3020 = vmatpush3.msra.mxu1 %v1194_v50  ;;  %v2112_v49 = vld [vmem:[%s4109_s14 + $0x60] sm:$0xff]  ;;  %v2676_v50 = vld [vmem:[%s4109_s14 + $0xd0] sm:$0xff] }
 0x377   :  { %3061 = vmatprep.subr.mxu0 %v2627_v25  ;;  %3021 = vmatprep.subr.mxu1 %v1193_v51 }
 0x378   :  { %3062 = vmatpush3.msra.mxu0 %v2627_v25  ;;  %3022 = vmatpush3.msra.mxu1 %v1193_v51  ;;  %v2111_v25 = vld [vmem:[%s4109_s14 + $0x58] sm:$0xff]  ;;  %v2675_v51 = vld [vmem:[%s4109_s14 + $0xc8] sm:$0xff] }
 0x379   :  { %3063 = vmatprep.subr.mxu0 %v2626_v52  ;;  %3068 = vmatprep.subr.mxu1 %v3261_v8 }
 0x37a   :  { %3064 = vmatpush3.msra.mxu0 %v2626_v52  ;;  %v2110_v52 = vld [vmem:[%s4109_s14 + $0x50] sm:$0xff] }
 0x37b   :  { %3093 = vmatprep.subr.mxu0 %v3261_v8 }
 0x414   :  { %v2983_v53 = vpop.f32.mrf.mxu0 }
 0x415   :  { %v1107_v60 = vadd.f32 %v2983_v53, %v2619_v59  ;;  %v2674_v53 = vld [vmem:[%s4109_s14 + $0xc0] sm:$0xff] }
 0x416   :  { %v1101_v54 = vpop.f32.mrf.mxu0 }
 0x417   :  { %v1102_v62 = vadd.f32 %v2619_v59, %v1101_v54  ;;  %v2109_v54 = vld [vmem:[%s4109_s14 + $0x48] sm:$0xff] }
 0x418   :  { %v2990_v55 = vpop.f32.mrf.mxu1  ;;  %v2671_v59 = vld [vmem:[%s4109_s14 + $0xa8] sm:$0xff] }
 0x41a   :  { %v1184_v56 = vpop.f32.mrf.mxu1  ;;  %v3032_v57 = vpop.f32.mrf.mxu0 }
 0x41b   :  { %3023 = vmatprep.mubr.f32.mxu1 %v1184_v56  ;;  %v2108_v56 = vld [vmem:[%s4109_s14 + $0x40] sm:$0xff] }
 0x41c   :  { %3024 = vmatmul.mubr.f32.vlgmr.msra.gmra.mxu1 %v2990_v55  ;;  %v1361_v58 = vpop.f32.mrf.mxu0  ;;  %v2673_v55 = vld [vmem:[%s4109_s14 + $0xb8] sm:$0xff] }
 0x41d   :  { %3065 = vmatprep.mubr.f32.mxu0 %v1361_v58  ;;  %3072 = vmatprep.mubr.msk.f32.mxu1 %vm3262_vm2, %v3261_v8  ;;  %v2107_v58 = vld [vmem:[%s4109_s14 + $0x38] sm:$0xff] }
 0x41e   :  { %3066 = vmatmul.mubr.f32.vlgmr.msra.gmra.mxu0 %v3032_v57  ;;  %v2672_v57 = vld [vmem:[%s4109_s14 + $0xb0] sm:$0xff] }
 0x41f   :  { %3101 = vmatprep.mubr.msk.f32.mxu0 %vm3262_vm2, %v3261_v8  ;;  %3094 = vmatpush3.msra.mxu0 %v2649_v12  ;;  %v2661_v12 = vld [vmem:[%s4108_s13] ss:$0 sm:$0xff] }
 0x420   :  { %3095 = vmatprep.subr.mxu0 %v3261_v8 }
 0x421   :  { %3096 = vmatpush3.msra.mxu0 %v2648_v14 }
 0x422   :  { %3097 = vmatprep.subr.mxu0 %v3261_v8 }
 0x423   :  { %3098 = vmatpush3.msra.mxu0 %v2647_v16 }
 0x424   :  { %3099 = vmatprep.subr.mxu0 %v3261_v8 }
 0x425   :  { %3100 = vmatpush3.msra.mxu0 %v2646_v18 }
 0x4dc   :  { %v3025_v61 = vpop.f32.mrf.mxu1 }
 0x4dd   :  { %v1285_v63 = vadd.f32 %v3025_v61, %v1107_v60  ;;  %v2106_v60 = vld [vmem:[%s4109_s14 + $0x30] sm:$0xff]  ;;  %v2105_v61 = vld [vmem:[%s4109_s14 + $0x28] sm:$0xff] }
 0x4de   :  { %v1275_v0 = vpop.f32.mrf.mxu1  ;;  %v3067_v1 = vpop.f32.mrf.mxu0 }
 0x4df   :  { %v1284_v2 = vadd.f32 %v1275_v0, %v1102_v62  ;;  %v1463_v3 = vadd.f32 %v3067_v1, %v1285_v63  ;;  %v2104_v62 = vld [vmem:[%s4109_s14 + $0x20] sm:$0xff]  ;;  %v2103_v0 = vld [vmem:[%s4109_s14 + $0x18] sm:$0xff] }
 0x4e0   :  { %v1453_v4 = vpop.f32.mrf.mxu0  ;;  %v2670_v63 = vld [vmem:[%s4109_s14 + $0xa0] sm:$0xff]  ;;  %v2669_v1 = vld [vmem:[%s4109_s14 + $0x98] sm:$0xff] }
 0x4e1   :  { %v1465_v5 = vmax.f32 %v1463_v3, 0.0  ;;  %v1462_v6 = vadd.f32 %v1453_v4, %v1284_v2  ;;  %v2102_v2 = vld [vmem:[%s4109_s14 + $0x10] sm:$0xff]  ;;  %v2101_v4 = vld [vmem:[%s4109_s14 + $0x8] sm:$0xff] }
 0x4e2   :  { %v2668_v3 = vld [vmem:[%s4109_s14 + $0x90] sm:$0xff] }
 0x4e3   :  { %v1464_v7 = vmax.f32 %v1462_v6, 0.0  ;;  %3069 = vmatpush3.msra.mxu1 %v1465_v5  ;;  %v2100_v6 = vld [vmem:[%s4109_s14] sm:$0xff] }
 0x4e4   :  { %3070 = vmatprep.subr.mxu1 %v3261_v8 }
 0x4e5   :  { %3071 = vmatpush3.msra.mxu1 %v1464_v7 }
 0x4e6   :  { %3073 = vmatmul.mubr.msk.f32.vlgmr.msra.gmra.mxu1 %vm78_vm0, %v1466_v9  ;;  %3075 = vmatprep.subr.mxu1 %v3261_v8 }
 0x4e7   :  { %3076 = vmatpush3.msra.mxu1 %v1465_v5  ;;  %3079 = vmatprep.mubr.msk.f32.mxu1 %vm3262_vm2, %v3261_v8  ;;  %v2667_v5 = vld [vmem:[%s4109_s14 + $0x88] sm:$0xff] }
 0x4e8   :  { %3077 = vmatprep.subr.mxu1 %v3261_v8 }
 0x4e9   :  { %3078 = vmatpush3.msra.mxu1 %v1464_v7  ;;  %v2666_v7 = vld [vmem:[%s4109_s14 + $0x80] sm:$0xff] }
 0x4ea   :  { %3080 = vmatmul.mubr.msk.f32.vlgmr.msra.gmra.mxu1 %vm78_vm0, %v2643_v10  ;;  %3082 = vmatprep.subr.mxu1 %v3261_v8 }
 0x4eb   :  { %3090 = vmatprep.mubr.msk.f32.mxu1 %vm3262_vm2, %v3261_v8  ;;  %3083 = vmatpush3.msra.mxu1 %v1619_v11 }
 0x4ec   :  { %3084 = vmatprep.subr.mxu1 %v3261_v8 }
 0x4ed   :  { %3085 = vmatpush3.msra.mxu1 %v1618_v13 }
 0x4ee   :  { %3086 = vmatprep.subr.mxu1 %v3261_v8 }
 0x4ef   :  { %3087 = vmatpush3.msra.mxu1 %v1617_v15 }
 0x4f0   :  { %3088 = vmatprep.subr.mxu1 %v3261_v8 }
 0x4f1   :  { %3089 = vmatpush3.msra.mxu1 %v1616_v17 }
 0x4f2   :  { %3104 = vmatprep.subr.mxu1 %v3261_v8 }
 0x5a6   :  { %v1536_v19 = vpop.f32.mrf.mxu1 }
 0x5a8   :  { %v3074_v20 = vpop.f32.mrf.mxu1 }
 0x5a9   :  { %v2662_v20 = vld [vmem:[%s4110_s15 + $0x20] sm:$0xff] }
 0x5aa   :  { %v1611_v21 = vpop.f32.mrf.mxu1 }
 0x5ab   :  { %v1615_v22 = vmax.f32 %v1536_v19, %v1611_v21  ;;  %v2096_v21 = vld [vmem:[%s4110_s15] sm:$0xff] }
 0x5ac   :  { %v3081_v23 = vpop.f32.mrf.mxu1 }
 0x5ad   :  { %3091 = vmatmul.mubr.msk.f32.vlgmr.msra.gmra.mxu1 %vm184_vm1, %v1615_v22  ;;  %3102 = vmatmul.mubr.msk.f32.vlgmr.msra.gmra.mxu0 %vm184_vm1, %v1615_v22 }
 0x5ae   :  { %3108 = vmatprep.mubr.msk.f32.mxu1 %vm3262_vm2, %v3261_v8  ;;  %3105 = vmatpush3.msra.mxu1 %v1772_v24 }
 0x5af   :  { %3106 = vmatprep.subr.mxu1 %v3261_v8  ;;  %3120 = vmatprep.mubr.msk.f32.mxu0 %vm1922_vm3, %v2652_v36  ;;  %v2690_v36 = vld [vmem:[%s4111_s16] ss:$0 sm:$0xff] }
 0x5b0   :  { %3107 = vmatpush3.msra.mxu1 %v1771_v28 }
 0x5b1   :  { %3111 = vmatprep.subr.mxu1 %v3261_v8 }
 0x66d   :  { %v1689_v30 = vpop.f32.mrf.mxu1  ;;  %v1764_v33 = vpop.f32.mrf.mxu0 }
 0x66e   :  { %v1768_v35 = vmax.f32 %v1689_v30, %v1764_v33  ;;  %v2663_v30 = vld [vmem:[%s4110_s15 + $0x28] sm:$0xff] }
 0x66f   :  { %v3092_v34 = vpop.f32.mrf.mxu1  ;;  %v3103_v38 = vpop.f32.mrf.mxu0  ;;  %v2097_v33 = vld [vmem:[%s4110_s15 + $0x8] sm:$0xff] }
 0x670   :  { %3109 = vmatmul.mubr.msk.f32.vlgmr.msra.gmra.mxu1 %vm78_vm0, %v1768_v35  ;;  %v2665_v34 = vld [vmem:[%s4110_s15 + $0x38] sm:$0xff] }
 0x671   :  { %3112 = vmatpush3.msra.mxu1 %v2655_v37  ;;  %3115 = vmatprep.mubr.msk.f32.mxu1 %vm3262_vm2, %v3261_v8  ;;  %v2098_v37 = vld [vmem:[%s4110_s15 + $0x10] sm:$0xff]  ;;  %v2099_v38 = vld [vmem:[%s4110_s15 + $0x18] sm:$0xff] }
 0x672   :  { %3113 = vmatprep.subr.mxu1 %v3261_v8  ;;  %v1770_v8 = vld [vmem:[%s4107_s12 + $0x8] sm:$0xff] }
 0x673   :  { %3114 = vmatpush3.msra.mxu1 %v2654_v39 }
 0x674   :  { %3116 = vmatmul.mubr.msk.f32.vlgmr.msra.gmra.mxu1 %vm78_vm0, %v1768_v35  ;;  %v2664_v35 = vld [vmem:[%s4110_s15 + $0x30] sm:$0xff]  ;;  %s3263_s15 = smov [#allocation2]  }
 0x675   :  { %3125 = vmatprep.mubr.msk.f32.mxu1 %vm1922_vm3, %v1769_v32  ;;  %s2522_s16 = sshll.u32 %s3263_s15, 4  ;;  %s2523_s16 = int_to_ptr.vmem [resolvable:$true] %s2522_s16 }
 0x676   :  { %s3239_s28 = scalar_lea.vmem %s2523_s16, 512  ;;  %p3244_p1 = scmp.lt.s32.totalorder %s2523_s16, %s2523_s16 }
 0x677   :  { %p3240_p0 = scmp.ne.s32.totalorder %s2523_s16, %s3239_s28  ;;  %p3245_p2 = scmp.lt.s32.totalorder %s3239_s28, %s3239_s28 }
 0x679   :  { %p3246_p3 = por %p3245_p2, %p3244_p1 }
 0x67b   :  { %p3247_p4 = pnand %p3246_p3, %p3240_p0 }
 0x730   :  { %v1842_v40 = vpop.f32.mrf.mxu1 }
 0x731   :  { %3123 = vmatprep.subr.mxu1 %v1842_v40 }
 0x732   :  { %v3110_v41 = vpop.f32.mrf.mxu1  ;;  %3124 = vmatpush3.msra.mxu1 %v1842_v40 }
 0x733   :  { %3126 = vmatmul.mubr.msk.f32.vlgmr.msra.gmra.mxu1 %vm1922_vm3, %v1770_v8  ;;  %3163 = vmatprep.subr.mxu1 %v2681_v31 }
 0x734   :  { %v1918_v43 = vpop.f32.mrf.mxu1  ;;  %3164 = vmatpush3.msra.mxu1 %v2681_v31 }
 0x735   :  { %3118 = vmatprep.subr.mxu0 %v1918_v43  ;;  %3165 = vmatprep.subr.mxu1 %v2680_v42 }
 0x736   :  { %v3117_v46 = vpop.f32.mrf.mxu1  ;;  %3119 = vmatpush3.msra.mxu0 %v1918_v43  ;;  %3166 = vmatpush3.msra.mxu1 %v2680_v42 }
 0x737   :  { %3121 = vmatmul.mubr.msk.f32.vlgmr.msra.gmra.mxu0 %vm1922_vm3, %v2653_v29  ;;  %3128 = vmatprep.subr.mxu0 %v2115_v44 }
 0x738   :  { %3129 = vmatpush3.msra.mxu0 %v2115_v44  ;;  %3167 = vmatprep.subr.mxu1 %v2679_v45 }
 0x739   :  { %3130 = vmatprep.subr.mxu0 %v2114_v27  ;;  %3168 = vmatpush3.msra.mxu1 %v2679_v45 }
 0x73a   :  { %3131 = vmatpush3.msra.mxu0 %v2114_v27  ;;  %3169 = vmatprep.subr.mxu1 %v2678_v47 }
 0x73b   :  { %3132 = vmatprep.subr.mxu0 %v2113_v48  ;;  %3170 = vmatpush3.msra.mxu1 %v2678_v47 }
 0x73c   :  { %3133 = vmatpush3.msra.mxu0 %v2113_v48  ;;  %3171 = vmatprep.subr.mxu1 %v2677_v26 }
 0x73d   :  { %3134 = vmatprep.subr.mxu0 %v2112_v49  ;;  %3172 = vmatpush3.msra.mxu1 %v2677_v26 }
 0x73e   :  { %3135 = vmatpush3.msra.mxu0 %v2112_v49  ;;  %3173 = vmatprep.subr.mxu1 %v2676_v50 }
 0x73f   :  { %3136 = vmatprep.subr.mxu0 %v2111_v25  ;;  %3174 = vmatpush3.msra.mxu1 %v2676_v50 }
 0x740   :  { %3137 = vmatpush3.msra.mxu0 %v2111_v25  ;;  %3175 = vmatprep.subr.mxu1 %v2675_v51 }
 0x741   :  { %3138 = vmatprep.subr.mxu0 %v2110_v52  ;;  %3176 = vmatpush3.msra.mxu1 %v2675_v51 }
 0x742   :  { %3139 = vmatpush3.msra.mxu0 %v2110_v52  ;;  %3177 = vmatprep.subr.mxu1 %v2674_v53 }
 0x743   :  { %3140 = vmatprep.subr.mxu0 %v2109_v54  ;;  %3178 = vmatpush3.msra.mxu1 %v2674_v53 }
 0x744   :  { %3141 = vmatpush3.msra.mxu0 %v2109_v54  ;;  %3179 = vmatprep.subr.mxu1 %v2673_v55 }
 0x745   :  { %3142 = vmatprep.subr.mxu0 %v2108_v56  ;;  %3180 = vmatpush3.msra.mxu1 %v2673_v55 }
 0x746   :  { %3143 = vmatpush3.msra.mxu0 %v2108_v56  ;;  %3181 = vmatprep.subr.mxu1 %v2672_v57 }
 0x747   :  { %3144 = vmatprep.subr.mxu0 %v2107_v58  ;;  %3182 = vmatpush3.msra.mxu1 %v2672_v57 }
 0x748   :  { %3145 = vmatpush3.msra.mxu0 %v2107_v58  ;;  %3183 = vmatprep.subr.mxu1 %v2671_v59 }
 0x749   :  { %3146 = vmatprep.subr.mxu0 %v2106_v60  ;;  %3184 = vmatpush3.msra.mxu1 %v2671_v59 }
 0x74a   :  { %3147 = vmatpush3.msra.mxu0 %v2106_v60  ;;  %3185 = vmatprep.subr.mxu1 %v2670_v63 }
 0x74b   :  { %3148 = vmatprep.subr.mxu0 %v2105_v61  ;;  %3186 = vmatpush3.msra.mxu1 %v2670_v63 }
 0x74c   :  { %3149 = vmatpush3.msra.mxu0 %v2105_v61  ;;  %3187 = vmatprep.subr.mxu1 %v2669_v1 }
 0x74d   :  { %3150 = vmatprep.subr.mxu0 %v2104_v62  ;;  %3188 = vmatpush3.msra.mxu1 %v2669_v1 }
 0x74e   :  { %3151 = vmatpush3.msra.mxu0 %v2104_v62  ;;  %3189 = vmatprep.subr.mxu1 %v2668_v3 }
 0x74f   :  { %3152 = vmatprep.subr.mxu0 %v2103_v0  ;;  %3190 = vmatpush3.msra.mxu1 %v2668_v3 }
 0x750   :  { %3153 = vmatpush3.msra.mxu0 %v2103_v0  ;;  %3191 = vmatprep.subr.mxu1 %v2667_v5 }
 0x751   :  { %3154 = vmatprep.subr.mxu0 %v2102_v2  ;;  %3192 = vmatpush3.msra.mxu1 %v2667_v5 }
 0x752   :  { %3155 = vmatpush3.msra.mxu0 %v2102_v2  ;;  %3193 = vmatprep.subr.mxu1 %v2666_v7 }
 0x753   :  { %3156 = vmatprep.subr.mxu0 %v2101_v4  ;;  %3194 = vmatpush3.msra.mxu1 %v2666_v7 }
 0x754   :  { %3157 = vmatpush3.msra.mxu0 %v2101_v4 }
 0x755   :  { %3158 = vmatprep.subr.mxu0 %v2100_v6 }
 0x756   :  { %3159 = vmatpush3.msra.mxu0 %v2100_v6 }
 0x7f3   :  { %v3127_v9 = vpop.f32.mrf.mxu1 }
 0x7f5   :  { %v2076_v14 = vpop.f32.mrf.mxu1 }
 0x7f7   :  { %v3122_v10 = vpop.f32.mrf.mxu0 }
 0x7f8   :  { %v2082_v11 = vadd.f32 %v3127_v9, %v3122_v10 }
 0x7f9   :  { %v1995_v13 = vpop.f32.mrf.mxu0 }
 0x7fa   :  { %v2077_v15 = vadd.f32 %v2076_v14, %v1995_v13  ;;  %v2093_v16 = vadd.f32 %v2661_v12, %v2082_v11 }
 0x7fc   :  { %v2092_v17 = vadd.f32 %v2661_v12, %v2077_v15  ;;  %v2095_v19 = vmax.f32 %v2093_v16, 0.0 }
 0x7fe   :  { %v2094_v18 = vmax.f32 %v2092_v17, 0.0 }
 0x800   :  { %3160 = vmatprep.mubr.f32.mxu0 %v2094_v18  ;;  %3195 = vmatprep.mubr.f32.mxu1 %v2094_v18 }
 0x801   :  { %3161 = vmatmul.mubr.f32.vlgmr.msra.gmra.mxu0 %v2095_v19  ;;  %3196 = vmatmul.mubr.f32.vlgmr.msra.gmra.mxu1 %v2095_v19 }
 0x802   :  { %3202 = vmatprep.mubr.msk.f32.mxu0 %vm78_vm0, %v2662_v20  ;;  %3212 = vmatprep.mubr.msk.f32.mxu1 %vm78_vm0, %v2096_v21 }
 0x8c1   :  { %v3162_v22 = vpop.f32.mrf.mxu0  ;;  %v3197_v23 = vpop.f32.mrf.mxu1 }
 0x8c2   :  { %3198 = vmatprep.subr.mxu0 %v3197_v23  ;;  %3208 = vmatprep.subr.mxu1 %v3162_v22 }
 0x8c3   :  { %v2182_v24 = vpop.f32.mrf.mxu0  ;;  %v2279_v28 = vpop.f32.mrf.mxu1  ;;  %3199 = vmatpush3.msra.mxu0 %v3197_v23  ;;  %3209 = vmatpush3.msra.mxu1 %v3162_v22 }
 0x8c4   :  { %3200 = vmatprep.subr.mxu0 %v2279_v28  ;;  %3210 = vmatprep.subr.mxu1 %v2182_v24 }
 0x8c5   :  { %3201 = vmatpush3.msra.mxu0 %v2279_v28  ;;  %3211 = vmatpush3.msra.mxu1 %v2182_v24 }
 0x8c6   :  { %3203 = vmatmul.mubr.msk.f32.vlgmr.msra.gmra.mxu0 %vm78_vm0, %v2663_v30  ;;  %3213 = vmatmul.mubr.msk.f32.vlgmr.msra.gmra.mxu1 %vm78_vm0, %v2097_v33 }
 0x8c7   :  { %3205 = vmatprep.mubr.msk.f32.mxu0 %vm78_vm0, %v2664_v35  ;;  %3215 = vmatprep.mubr.msk.f32.mxu1 %vm78_vm0, %v2098_v37 }
 0x8ca   :  { %3206 = vmatmul.mubr.msk.f32.gmra.mxu0 %vm78_vm0, %v2665_v34  ;;  %3216 = vmatmul.mubr.msk.f32.gmra.mxu1 %vm78_vm0, %v2099_v38 }
 0x986   :  { %v3204_v39 = vpop.f32.mrf.mxu0  ;;  %v3214_v32 = vpop.f32.mrf.mxu1 }
 0x987   :  { %v2469_v40 = vadd.f32 %v3214_v32, %v3204_v39 }
 0x988   :  { %v2366_v8 = vpop.f32.mrf.mxu0  ;;  %v2463_v31 = vpop.f32.mrf.mxu1 }
 0x989   :  { %v2490_v41 = vadd.f32 %v2690_v36, %v2469_v40  ;;  %v2464_v42 = vadd.f32 %v2463_v31, %v2366_v8 }
 0x98a   :  { %v3207_v43 = vpop.f32.mrf.mxu0  ;;  %v3217_v29 = vpop.f32.mrf.mxu1 }
 0x98b   :  { %v2494_v44 = vsub.f32 0.0, %v2490_v41  ;;  %v2489_v45 = vadd.f32 %v2690_v36, %v2464_v42  ;;  %v2479_v46 = vadd.f32 %v3217_v29, %v3207_v43 }
 0x98c   :  { %v2376_v27 = vpop.f32.mrf.mxu0  ;;  %v2473_v47 = vpop.f32.mrf.mxu1 }
 0x98d   :  { %v2499_v48 = vmul.f32 1.442695, %v2494_v44  ;;  %v2493_v26 = vsub.f32 0.0, %v2489_v45  ;;  %v2492_v49 = vadd.f32 %v2690_v36, %v2479_v46  ;;  %v2474_v50 = vadd.f32 %v2473_v47, %v2376_v27 }
 0x98f   :  { %3223 = vpow2.f32 %v2499_v48  ;;  %v2497_v25 = vmul.f32 1.442695, %v2493_v26  ;;  %v2496_v51 = vsub.f32 0.0, %v2492_v49  ;;  %v2491_v52 = vadd.f32 %v2690_v36, %v2474_v50 }
 0x991   :  { %3225 = vpow2.f32 %v2497_v25  ;;  %v2503_v53 = vmul.f32 1.442695, %v2496_v51  ;;  %v2495_v54 = vsub.f32 0.0, %v2491_v52 }
 0x993   :  { %3227 = vpow2.f32 %v2503_v53  ;;  %v2501_v55 = vmul.f32 1.442695, %v2495_v54 }
 0x995   :  { %3229 = vpow2.f32 %v2501_v55 }
 0x99c   :  { %v3224_v56 = vpop.eup %3223 }
 0x99d   :  { %v2506_v57 = vadd.f32 1.0, %v3224_v56 }
 0x99e   :  { %v3226_v58 = vpop.eup %3225 }
 0x99f   :  { %3231 = vrcp.f32 %v2506_v57  ;;  %v2505_v59 = vadd.f32 1.0, %v3226_v58 }
 0x9a0   :  { %v3228_v60 = vpop.eup %3227 }
 0x9a1   :  { %3233 = vrcp.f32 %v2505_v59  ;;  %v2508_v61 = vadd.f32 1.0, %v3228_v60 }
 0x9a2   :  { %v3230_v62 = vpop.eup %3229 }
 0x9a3   :  { %3235 = vrcp.f32 %v2508_v61  ;;  %v2507_v63 = vadd.f32 1.0, %v3230_v62 }
 0x9a5   :  { %3237 = vrcp.f32 %v2507_v63 }
 0x9ac   :  { %v3232_v0 = vpop.eup %3231 }
 0x9ad   :  { %2514 = vst.msk [vmem:[#allocation2 + $0x8] sm:$0xff] %vm78_vm0, %v3232_v0 }
 0x9ae   :  { %v3234_v1 = vpop.eup %3233 }
 0x9af   :  { %2513 = vst.msk [vmem:[#allocation2] sm:$0xff] %vm78_vm0, %v3234_v1 }
 0x9b0   :  { %v3236_v2 = vpop.eup %3235 }
 0x9b1   :  { %2516 = vst.msk [vmem:[#allocation2 + $0x18] sm:$0xff] %vm78_vm0, %v3236_v2 }
 0x9b2   :  { %v3238_v3 = vpop.eup %3237 }
 0x9b3   :  { %2515 = vst.msk [vmem:[#allocation2 + $0x10] sm:$0xff] %vm78_vm0, %v3238_v3 }
 0x9b4   :  { %3250 = shalt.err (!%p3247_p4)
}
 0x9b5   :  { %s3264_s2 = smov 128   ;;  %s3265_s0 = smov 8  }
 0x9b6   :  { %2528 = dma.vmem_to_hbm [thread:$0]  %s2523_s16, 512, %s4112_s17, [#allocation3], %s3264_s2, %s3264_s2, %s3265_s0  }
 0x9b7   :  { %3259 = dma.done.wait [#allocation3], 512  }
 0x9b8   :  { %3260 = vsyncadd [#allocation3], 4294966784 }
 0x9b9   :  { %2532 = vsyncpa [#allocation3], 1 }

</bundles_post_ra>
